<compile_context>
chip_gen: v7x
topology: tpu7x:2x2x1
jax: 0.10.0
libtpu: 0.0.40
codegen_flags: <defaults>
</compile_context>

<pallas_src>
import functools

import jax
import jax.numpy as jnp
from jax.experimental import pallas as pl
from jax.experimental.pallas import tpu as pltpu


# ------------------------------ in-kernel helpers ---------------------------
def _layernorm(x, g, b, eps=1e-5):
    # stats and affine in f32 (v5e VPU/EUP have no bf16)
    mu = jnp.mean(x, axis=-1, keepdims=True)
    var = jnp.mean((x - mu) ** 2, axis=-1, keepdims=True)
    return (x - mu) * jax.lax.rsqrt(var + eps) * g + b


# --------------- fused ViT kernel: grid = (batch_chunks, depth) --------------
def _vit_kernel(n_heads, Bc, Np, n_tok, mlp_dim,
                patches_ref, wp_ref, extra_ref, vecs_ref,
                wqkv_ref, wo_ref, w1_ref, w2_ref,
                hg_ref, hb_ref, hw_ref, hbias_ref,
                o_ref, acc):
    d = pl.program_id(1)
    D = wp_ref.shape[-1]
    hd = D // n_heads

    # ---- layer-0 prologue: patch projection + (cls, pos, bias) embedding ----
    # row 0 of each batch element is a zero "patch"; `extra` already holds
    # cls+pos0 for row 0 and pos_i + proj_bias for patch rows (zeros for pad).
    @pl.when(d == 0)
    def _():
        proj = jnp.dot(patches_ref[...], wp_ref[...],
                       preferred_element_type=jnp.float32)          # (Bc*Np, D)
        acc[...] = (proj.reshape(Bc, Np, D)
                    + extra_ref[...][None]).reshape(Bc * Np, D)

    x = acc[...]                                                     # f32

    # packed per-layer vectors: rows = [ln1_g, ln1_b, bqkv, bo, ln2_g, ln2_b, b1, b2]
    vec = vecs_ref[0]                                                # (8, 3D) f32
    ln1g, ln1b = vec[0:1, :D], vec[1:2, :D]
    bqkv = vec[2:3, :]
    bo = vec[3:4, :D]
    ln2g, ln2b = vec[4:5, :D], vec[5:6, :D]
    b1 = vec[6:7, :mlp_dim]
    b2 = vec[7:8, :D]

    # ---------------- multi-head self-attention (pre-norm) ------------------
    h = _layernorm(x, ln1g, ln1b)
    qkv = jnp.dot(h.astype(jnp.bfloat16), wqkv_ref[0],
                  preferred_element_type=jnp.float32) + bqkv         # (Bc*Np, 3D)
    q = qkv[:, 0 * D:1 * D].reshape(Bc, Np, D)                       # Q already
    k = qkv[:, 1 * D:2 * D].reshape(Bc, Np, D)                       # pre-scaled
    v = qkv[:, 2 * D:3 * D].reshape(Bc, Np, D)

    # key-padding mask (token axis padded from n_tok up to Np)
    kmask = jax.lax.broadcasted_iota(jnp.int32, (Np, Np), 1) < n_tok
    wo_w = wo_ref[0]                                                 # (D, D) bf16

    # Per-head output projection folded in: concat(heads) @ Wo ==
    # sum_h head_h @ Wo[h*hd:(h+1)*hd, :]  -> no lane concatenate, no head
    # output stays live, and each partial-Wo matmul is full 128 lanes wide.
    attn = jnp.zeros((Bc * Np, D), jnp.float32)
    for hi in range(n_heads):                                        # static unroll
        sl = slice(hi * hd, (hi + 1) * hd)
        qh = q[:, :, sl].astype(jnp.bfloat16)
        kh = k[:, :, sl].astype(jnp.bfloat16)
        vh = v[:, :, sl].astype(jnp.bfloat16)
        s = jnp.einsum("bqd,bkd->bqk", qh, kh,
                       preferred_element_type=jnp.float32)           # scale folded
        s = jnp.where(kmask[None], s, -1e30)
        s = s - jnp.max(s, axis=-1, keepdims=True)
        p = jnp.exp(s)
        p = p * pl.reciprocal(jnp.sum(p, axis=-1, keepdims=True), approx=True)
        oh = jnp.einsum("bqk,bkd->bqd", p.astype(jnp.bfloat16), vh,
                        preferred_element_type=jnp.float32)          # (Bc, Np, hd)
        attn = attn + jnp.dot(oh.reshape(Bc * Np, hd).astype(jnp.bfloat16),
                              wo_w[sl, :],
                              preferred_element_type=jnp.float32)
    x = x + attn + bo

    # ------------------------------ MLP (pre-norm) ---------------------------
    h2 = _layernorm(x, ln2g, ln2b)
    m = jnp.dot(h2.astype(jnp.bfloat16), w1_ref[0],
                preferred_element_type=jnp.float32) + b1
    # TODO(synk): reference nn.GELU() default is the exact erf form; tanh
    # approximation is used here.
    m = jax.nn.gelu(m, approximate=True)
    m = jnp.dot(m.astype(jnp.bfloat16), w2_ref[0],
                preferred_element_type=jnp.float32) + b2
    x = x + m
    acc[...] = x                                            # carry to next layer

    # ------- classifier head on the last layer, cls rows only ---------------
    @pl.when(d == pl.num_programs(1) - 1)
    def _():
        cls = x.reshape(Bc, Np, D)[:, 0, :]                           # (Bc, D)
        hf = _layernorm(cls, hg_ref[...], hb_ref[...])
        logits = (jnp.dot(hf.astype(jnp.bfloat16), hw_ref[...],
                          preferred_element_type=jnp.float32)
                  + hbias_ref[...])                                   # (Bc, Cp)
        o_ref[0] = logits


# ------------------------------ plain-JAX glue -------------------------------
def patching(img, ph, pw):
    # (B, C, H, W) -> (B, n_patches, ph*pw*C)
    B, C, H, W = img.shape
    nh, nw = H // ph, W // pw
    x = img.reshape(B, C, nh, ph, nw, pw)
    x = x.transpose(0, 2, 4, 3, 5, 1)                       # (B, nh, nw, ph, pw, C)
    return x.reshape(B, nh * nw, ph * pw * C)


# ------------------------------ full forward ---------------------------------
def vit_forward(img, params, *, patch_h, patch_w, n_heads, batch_chunk=1):
    B = img.shape[0]
    patches = patching(img, patch_h, patch_w)               # (B, P, PD)
    _, P, PD = patches.shape
    D = params["proj_w"].shape[-1]
    mlp_dim = params["w1"].shape[-1]
    n_classes = params["head_w"].shape[-1]
    depth = params["wqkv"].shape[0]
    n_tok = P + 1                                           # cls + patches
    Np = ((n_tok + 15) // 16) * 16                          # bf16 sublane tile
    Cp = ((n_classes + 127) // 128) * 128                   # lane-dense head
    assert B % batch_chunk == 0
    Bc = batch_chunk
    n_chunks = B // Bc

    # patches in bf16 (they only feed a bf16 matmul; halves HBM->VMEM bytes).
    # cls token occupies row 0 as a zero patch; padding rows are zero.
    patches_pad = jnp.pad(patches, ((0, 0), (1, Np - 1 - P), (0, 0)))
    patches2d = patches_pad.reshape(B * Np, PD).astype(jnp.bfloat16)

    # one (Np, D) embedding table: row 0 = cls + pos0, rows 1..P = pos_i + proj_b
    pos = params["pos_emb"]                                 # (1, n_tok, D)
    extra = jnp.concatenate(
        [params["cls_token"][:, 0] + pos[:, 0],
         pos[0, 1:] + params["proj_b"]], axis=0)
    extra = jnp.pad(extra, ((0, Np - n_tok), (0, 0)))       # (Np, D) f32

    # fold 1/sqrt(head_dim) into the Q columns of wqkv / bqkv (zero kernel cost)
    hd = D // n_heads
    scale = 1.0 / float(hd) ** 0.5
    col_scale = jnp.concatenate([jnp.full((D,), scale, jnp.float32),
                                 jnp.ones((2 * D,), jnp.float32)])
    wqkv = (params["wqkv"].astype(jnp.float32) * col_scale).astype(jnp.bfloat16)
    bqkv = params["bqkv"] * col_scale

    # pack the 8 tiny per-layer vectors into one (depth, 8, 3*dim) array
    W3 = 3 * D

    def row(a):
        return jnp.pad(a, ((0, 0), (0, 0), (0, W3 - a.shape[-1])))

    vecs = jnp.concatenate(
        [row(params["ln1_g"]), row(params["ln1_b"]), row(bqkv), row(params["bo"]),
         row(params["ln2_g"]), row(params["ln2_b"]), row(params["b1"]),
         row(params["b2"])], axis=1)                        # (depth, 8, 3D) f32

    # pad classifier head to a lane-dense 128-wide class axis (pad is free)
    head_w = jnp.pad(params["head_w"], ((0, 0), (0, Cp - n_classes)))
    head_b = jnp.pad(params["head_b"], ((0, 0), (0, Cp - n_classes)))

    kernel = functools.partial(_vit_kernel, n_heads, Bc, Np, n_tok, mlp_dim)

    def const_spec(a):                                      # loaded once, resident
        nd = a.ndim
        return pl.BlockSpec(a.shape, lambda b, d, nd=nd: (0,) * nd)

    def layer_spec(a):                                      # layer d+1 prefetched
        nd = a.ndim
        return pl.BlockSpec((1,) + a.shape[1:],
                            lambda b, d, nd=nd: (d,) + (0,) * (nd - 1))

    args = [patches2d, params["proj_w"], extra,
            vecs, wqkv, params["wo"], params["w1"], params["w2"],
            params["head_ln_g"], params["head_ln_b"], head_w, head_b]
    in_specs = ([pl.BlockSpec((Bc * Np, PD), lambda b, d: (b, 0)),
                 const_spec(params["proj_w"]), const_spec(extra)]
                + [layer_spec(a) for a in
                   (vecs, wqkv, params["wo"], params["w1"], params["w2"])]
                + [const_spec(a) for a in
                   (params["head_ln_g"], params["head_ln_b"], head_w, head_b)])

    grid_spec = pltpu.PrefetchScalarGridSpec(
        num_scalar_prefetch=0,
        grid=(n_chunks, depth),                      # batch chunks x depth
        in_specs=in_specs,
        out_specs=pl.BlockSpec((1, Bc, Cp), lambda b, d: (b, 0, 0)),
        scratch_shapes=[pltpu.VMEM((Bc * Np, D), jnp.float32)],
    )
    out = pl.pallas_call(
        kernel,
        out_shape=jax.ShapeDtypeStruct((n_chunks, Bc, Cp), jnp.float32),
        grid_spec=grid_spec,
        compiler_params=pltpu.CompilerParams(
            dimension_semantics=("parallel", "arbitrary")),
    )(*args)

    return out.reshape(B, Cp)[:, :n_classes]                # (B, n_classes)


# ------------------------------ parameter init -------------------------------
def init_params(key, *, patch_dim, dim, depth, mlp_dim, n_classes, n_patches):
    n_tokens = n_patches + 1
    ks = jax.random.split(key, 14)

    def w(kk, shape, fan_in):                               # bf16 matmul weights
        return (jax.random.normal(kk, shape, jnp.float32)
                / jnp.sqrt(fan_in)).astype(jnp.bfloat16)

    def b(kk, shape):                                       # f32 biases / embeddings
        return 0.02 * jax.random.normal(kk, shape, jnp.float32)

    return {
        # patch projection
        "proj_w": w(ks[0], (patch_dim, dim), patch_dim),
        "proj_b": b(ks[1], (1, dim)),
        # embedding
        "cls_token": b(ks[2], (1, 1, dim)),
        "pos_emb": b(ks[3], (1, n_tokens, dim)),
        # transformer encoder — per-layer params stacked on a leading depth axis
        "ln1_g": jnp.ones((depth, 1, dim), jnp.float32),
        "ln1_b": jnp.zeros((depth, 1, dim), jnp.float32),
        "wqkv": w(ks[4], (depth, dim, 3 * dim), dim),
        "bqkv": b(ks[5], (depth, 1, 3 * dim)),
        "wo": w(ks[6], (depth, dim, dim), dim),
        "bo": b(ks[7], (depth, 1, dim)),
        "ln2_g": jnp.ones((depth, 1, dim), jnp.float32),
        "ln2_b": jnp.zeros((depth, 1, dim), jnp.float32),
        "w1": w(ks[8], (depth, dim, mlp_dim), dim),
        "b1": b(ks[9], (depth, 1, mlp_dim)),
        "w2": w(ks[10], (depth, mlp_dim, dim), mlp_dim),
        "b2": b(ks[11], (depth, 1, dim)),
        # MLP head
        "head_ln_g": jnp.ones((1, dim), jnp.float32),
        "head_ln_b": jnp.zeros((1, dim), jnp.float32),
        "head_w": w(ks[12], (dim, n_classes), dim),
        "head_b": b(ks[13], (1, n_classes)),
    }


# ----------------------------------- main ------------------------------------
if __name__ == "__main__":
    batch, channels = 2, 4
    image_h = image_w = 16
    patch_h = patch_w = 8
    # dim / mlp_dim chosen as multiples of 128 so all tiles are lane-dense.
    dim, depth, n_heads, mlp_dim, n_classes = 128, 2, 4, 256, 8

    n_patches = (image_h // patch_h) * (image_w // patch_w)      # 4
    patch_dim = channels * patch_h * patch_w                     # 256

    key = jax.random.PRNGKey(0)
    k_img, k_params = jax.random.split(key)
    img = jax.random.normal(k_img, (batch, channels, image_h, image_w),
                            jnp.float32)
    params = init_params(k_params, patch_dim=patch_dim, dim=dim, depth=depth,
                         mlp_dim=mlp_dim, n_classes=n_classes,
                         n_patches=n_patches)

    fwd = jax.jit(functools.partial(vit_forward, patch_h=patch_h,
                                    patch_w=patch_w, n_heads=n_heads,
                                    batch_chunk=1))
    out = fwd(img, params)
    jax.block_until_ready(out)
    assert out.shape == (batch, n_classes)
    assert bool(jnp.all(jnp.isfinite(out)))
    print("KERNEL_OK")
</pallas_src>

<mosaic_0001>
module attributes {stable_mosaic.version = 11 : i64} {
  func.func @_vit_kernel(%arg0: i32, %arg1: i32, %arg2: memref<16x256xbf16, #tpu.memory_space<vmem>>, %arg3: memref<256x128xbf16, #tpu.memory_space<vmem>>, %arg4: memref<16x128xf32, #tpu.memory_space<vmem>>, %arg5: memref<1x8x384xf32, #tpu.memory_space<vmem>>, %arg6: memref<1x128x384xbf16, #tpu.memory_space<vmem>>, %arg7: memref<1x128x128xbf16, #tpu.memory_space<vmem>>, %arg8: memref<1x128x256xbf16, #tpu.memory_space<vmem>>, %arg9: memref<1x256x128xbf16, #tpu.memory_space<vmem>>, %arg10: memref<1x128xf32, #tpu.memory_space<vmem>>, %arg11: memref<1x128xf32, #tpu.memory_space<vmem>>, %arg12: memref<128x128xbf16, #tpu.memory_space<vmem>>, %arg13: memref<1x128xf32, #tpu.memory_space<vmem>>, %arg14: memref<1x1x128xf32, #tpu.memory_space<vmem>>, %arg15: memref<16x128xf32, #tpu.memory_space<vmem>>) attributes {dimension_semantics = [#tpu.dimension_semantics<parallel>, #tpu.dimension_semantics<arbitrary>], iteration_bounds = array<i64: 2, 2>, scalar_prefetch = 0 : i64, scratch_operands = 1 : i64, tpu.core_type = #tpu.core_type<tc>, window_params = [{transform_indices = @transform_0, window_bounds = array<i64: 16, 256>}, {pipeline_mode = #tpu.pipeline_mode<synchronous>, transform_indices = @transform_1, window_bounds = array<i64: 256, 128>}, {pipeline_mode = #tpu.pipeline_mode<synchronous>, transform_indices = @transform_2, window_bounds = array<i64: 16, 128>}, {transform_indices = @transform_3, window_bounds = array<i64: 1, 8, 384>}, {transform_indices = @transform_4, window_bounds = array<i64: 1, 128, 384>}, {transform_indices = @transform_5, window_bounds = array<i64: 1, 128, 128>}, {transform_indices = @transform_6, window_bounds = array<i64: 1, 128, 256>}, {transform_indices = @transform_7, window_bounds = array<i64: 1, 256, 128>}, {pipeline_mode = #tpu.pipeline_mode<synchronous>, transform_indices = @transform_8, window_bounds = array<i64: 1, 128>}, {pipeline_mode = #tpu.pipeline_mode<synchronous>, transform_indices = @transform_9, window_bounds = array<i64: 1, 128>}, {pipeline_mode = #tpu.pipeline_mode<synchronous>, transform_indices = @transform_10, window_bounds = array<i64: 128, 128>}, {pipeline_mode = #tpu.pipeline_mode<synchronous>, transform_indices = @transform_11, window_bounds = array<i64: 1, 128>}, {transform_indices = @transform_12, window_bounds = array<i64: 1, 1, 128>}]} {
    %c0_i32 = arith.constant 0 : i32
    %0 = arith.cmpi eq, %arg1, %c0_i32 : i32
    %1 = arith.extui %0 : i1 to i32
    %c0_i32_0 = arith.constant 0 : i32
    %2 = arith.cmpi ne, %1, %c0_i32_0 : i32
    scf.if %2 {
      %c0_61 = arith.constant 0 : index
      %c0_62 = arith.constant 0 : index
      %217 = vector.load %arg2[%c0_61, %c0_62] : memref<16x256xbf16, #tpu.memory_space<vmem>>, vector<16x256xbf16>
      %c0_63 = arith.constant 0 : index
      %c0_64 = arith.constant 0 : index
      %218 = vector.load %arg3[%c0_63, %c0_64] : memref<256x128xbf16, #tpu.memory_space<vmem>>, vector<256x128xbf16>
      %cst_65 = arith.constant dense<0.000000e+00> : vector<16x128xf32>
      %219 = tpu.matmul %217, %218, %cst_65 {dimension_numbers = #tpu.dot_dimension_numbers<[1], [0], [0], [1], [0, 0, 1, 1], [], []>} : vector<16x256xbf16>, vector<256x128xbf16>, vector<16x128xf32> -> vector<16x128xf32>
      %220 = vector.shape_cast %219 : vector<16x128xf32> to vector<1x16x128xf32>
      %c0_66 = arith.constant 0 : index
      %c0_67 = arith.constant 0 : index
      %221 = vector.load %arg4[%c0_66, %c0_67] : memref<16x128xf32, #tpu.memory_space<vmem>>, vector<16x128xf32>
      %222 = vector.shape_cast %221 : vector<16x128xf32> to vector<1x16x128xf32>
      %223 = arith.addf %220, %222 : vector<1x16x128xf32>
      %224 = vector.shape_cast %223 : vector<1x16x128xf32> to vector<16x128xf32>
      %c0_68 = arith.constant 0 : index
      %c0_69 = arith.constant 0 : index
      %225 = vector.load %arg15[%c0_68, %c0_69] : memref<16x128xf32, #tpu.memory_space<vmem>>, vector<16x128xf32>
      tpu.vector_store %arg15[%c0_68, %c0_69], %224 {strides = array<i32>} : memref<16x128xf32, #tpu.memory_space<vmem>>, vector<16x128xf32>,
    } else {
    }
    %c0 = arith.constant 0 : index
    %c0_1 = arith.constant 0 : index
    %3 = vector.load %arg15[%c0, %c0_1] : memref<16x128xf32, #tpu.memory_space<vmem>>, vector<16x128xf32>
    %c0_2 = arith.constant 0 : index
    %c0_3 = arith.constant 0 : index
    %c0_4 = arith.constant 0 : index
    %4 = vector.load %arg5[%c0_2, %c0_3, %c0_4] : memref<1x8x384xf32, #tpu.memory_space<vmem>>, vector<1x8x384xf32>
    %5 = vector.shape_cast %4 : vector<1x8x384xf32> to vector<8x384xf32>
    %6 = vector.extract_strided_slice %5 {offsets = [0, 0], sizes = [1, 128], strides = [1, 1]} : vector<8x384xf32> to vector<1x128xf32>
    %7 = vector.extract_strided_slice %5 {offsets = [1, 0], sizes = [1, 128], strides = [1, 1]} : vector<8x384xf32> to vector<1x128xf32>
    %8 = vector.extract_strided_slice %5 {offsets = [2, 0], sizes = [1, 384], strides = [1, 1]} : vector<8x384xf32> to vector<1x384xf32>
    %9 = vector.extract_strided_slice %5 {offsets = [3, 0], sizes = [1, 128], strides = [1, 1]} : vector<8x384xf32> to vector<1x128xf32>
    %10 = vector.extract_strided_slice %5 {offsets = [4, 0], sizes = [1, 128], strides = [1, 1]} : vector<8x384xf32> to vector<1x128xf32>
    %11 = vector.extract_strided_slice %5 {offsets = [5, 0], sizes = [1, 128], strides = [1, 1]} : vector<8x384xf32> to vector<1x128xf32>
    %12 = vector.extract_strided_slice %5 {offsets = [6, 0], sizes = [1, 256], strides = [1, 1]} : vector<8x384xf32> to vector<1x256xf32>
    %13 = vector.extract_strided_slice %5 {offsets = [7, 0], sizes = [1, 128], strides = [1, 1]} : vector<8x384xf32> to vector<1x128xf32>
    %cst = arith.constant dense<0.000000e+00> : vector<16xf32>
    %14 = vector.multi_reduction <add>, %3, %cst [1] : vector<16x128xf32> to vector<16xf32>
    %15 = vector.shape_cast %14 : vector<16xf32> to vector<16x1xf32>
    %cst_5 = arith.constant 1.280000e+02 : f32
    %16 = vector.broadcast %cst_5 : f32 to vector<16x1xf32>
    %17 = arith.divf %15, %16 : vector<16x1xf32>
    %18 = vector.broadcast %17 : vector<16x1xf32> to vector<16x128xf32>
    %19 = arith.subf %3, %18 : vector<16x128xf32>
    %20 = arith.mulf %19, %19 : vector<16x128xf32>
    %cst_6 = arith.constant dense<0.000000e+00> : vector<16xf32>
    %21 = vector.multi_reduction <add>, %20, %cst_6 [1] : vector<16x128xf32> to vector<16xf32>
    %22 = vector.shape_cast %21 : vector<16xf32> to vector<16x1xf32>
    %cst_7 = arith.constant 1.280000e+02 : f32
    %23 = vector.broadcast %cst_7 : f32 to vector<16x1xf32>
    %24 = arith.divf %22, %23 : vector<16x1xf32>
    %25 = vector.broadcast %17 : vector<16x1xf32> to vector<16x128xf32>
    %26 = arith.subf %3, %25 : vector<16x128xf32>
    %cst_8 = arith.constant 9.99999974E-6 : f32
    %27 = vector.broadcast %cst_8 : f32 to vector<16x1xf32>
    %28 = arith.addf %24, %27 : vector<16x1xf32>
    %29 = math.rsqrt %28 : vector<16x1xf32>
    %30 = vector.broadcast %29 : vector<16x1xf32> to vector<16x128xf32>
    %31 = arith.mulf %26, %30 : vector<16x128xf32>
    %32 = vector.broadcast %6 : vector<1x128xf32> to vector<16x128xf32>
    %33 = arith.mulf %31, %32 : vector<16x128xf32>
    %34 = vector.broadcast %7 : vector<1x128xf32> to vector<16x128xf32>
    %35 = arith.addf %33, %34 : vector<16x128xf32>
    %36 = arith.truncf %35 : vector<16x128xf32> to vector<16x128xbf16>
    %c0_9 = arith.constant 0 : index
    %c0_10 = arith.constant 0 : index
    %c0_11 = arith.constant 0 : index
    %37 = vector.load %arg6[%c0_9, %c0_10, %c0_11] : memref<1x128x384xbf16, #tpu.memory_space<vmem>>, vector<1x128x384xbf16>
    %38 = vector.shape_cast %37 : vector<1x128x384xbf16> to vector<128x384xbf16>
    %cst_12 = arith.constant dense<0.000000e+00> : vector<16x384xf32>
    %39 = tpu.matmul %36, %38, %cst_12 {dimension_numbers = #tpu.dot_dimension_numbers<[1], [0], [0], [1], [0, 0, 1, 1], [], []>} : vector<16x128xbf16>, vector<128x384xbf16>, vector<16x384xf32> -> vector<16x384xf32>
    %40 = vector.broadcast %8 : vector<1x384xf32> to vector<16x384xf32>
    %41 = arith.addf %39, %40 : vector<16x384xf32>
    %42 = vector.extract_strided_slice %41 {offsets = [0, 0], sizes = [16, 128], strides = [1, 1]} : vector<16x384xf32> to vector<16x128xf32>
    %43 = vector.shape_cast %42 : vector<16x128xf32> to vector<1x16x128xf32>
    %44 = vector.extract_strided_slice %41 {offsets = [0, 128], sizes = [16, 128], strides = [1, 1]} : vector<16x384xf32> to vector<16x128xf32>
    %45 = vector.shape_cast %44 : vector<16x128xf32> to vector<1x16x128xf32>
    %46 = vector.extract_strided_slice %41 {offsets = [0, 256], sizes = [16, 128], strides = [1, 1]} : vector<16x384xf32> to vector<16x128xf32>
    %47 = vector.shape_cast %46 : vector<16x128xf32> to vector<1x16x128xf32>
    %48 = tpu.iota {dimensions = array<i32: 1>} : vector<16x16xi32>
    %c5_i32 = arith.constant 5 : i32
    %49 = vector.broadcast %c5_i32 : i32 to vector<16x16xi32>
    %50 = arith.cmpi slt, %48, %49 : vector<16x16xi32>
    %c0_13 = arith.constant 0 : index
    %c0_14 = arith.constant 0 : index
    %c0_15 = arith.constant 0 : index
    %51 = vector.load %arg7[%c0_13, %c0_14, %c0_15] : memref<1x128x128xbf16, #tpu.memory_space<vmem>>, vector<1x128x128xbf16>
    %52 = vector.shape_cast %51 : vector<1x128x128xbf16> to vector<128x128xbf16>
    %cst_16 = arith.constant 0.000000e+00 : f32
    %53 = vector.broadcast %cst_16 : f32 to vector<16x128xf32>
    %54 = vector.extract_strided_slice %43 {offsets = [0, 0, 0], sizes = [1, 16, 32], strides = [1, 1, 1]} : vector<1x16x128xf32> to vector<1x16x32xf32>
    %55 = arith.truncf %54 : vector<1x16x32xf32> to vector<1x16x32xbf16>
    %56 = vector.extract_strided_slice %45 {offsets = [0, 0, 0], sizes = [1, 16, 32], strides = [1, 1, 1]} : vector<1x16x128xf32> to vector<1x16x32xf32>
    %57 = arith.truncf %56 : vector<1x16x32xf32> to vector<1x16x32xbf16>
    %58 = vector.extract_strided_slice %47 {offsets = [0, 0, 0], sizes = [1, 16, 32], strides = [1, 1, 1]} : vector<1x16x128xf32> to vector<1x16x32xf32>
    %59 = arith.truncf %58 : vector<1x16x32xf32> to vector<1x16x32xbf16>
    "tpu.trace_start"() <{level = 10 : i32, message = "bqd,bkd->bqk"}> : () -> ()
    %cst_17 = arith.constant dense<0.000000e+00> : vector<1x16x16xf32>
    %60 = tpu.matmul %55, %57, %cst_17 {dimension_numbers = #tpu.dot_dimension_numbers<[2], [2], [1], [1], [0, 0, 0, 1, 1, 1], [0], [0]>} : vector<1x16x32xbf16>, vector<1x16x32xbf16>, vector<1x16x16xf32> -> vector<1x16x16xf32>
    "tpu.trace_stop"() : () -> ()
    %61 = vector.shape_cast %50 : vector<16x16xi1> to vector<1x16x16xi1>
    %cst_18 = arith.constant -1.000000e+30 : f32
    %62 = vector.broadcast %cst_18 : f32 to vector<1x16x16xf32>
    %63 = arith.select %61, %60, %62 : vector<1x16x16xi1>, vector<1x16x16xf32>
    %cst_19 = arith.constant dense<0xFF800000> : vector<1x16xf32>
    %64 = vector.multi_reduction <maximumf>, %63, %cst_19 [2] : vector<1x16x16xf32> to vector<1x16xf32>
    %65 = vector.shape_cast %64 : vector<1x16xf32> to vector<1x16x1xf32>
    %66 = vector.broadcast %65 : vector<1x16x1xf32> to vector<1x16x16xf32>
    %67 = arith.subf %63, %66 : vector<1x16x16xf32>
    %68 = math.exp %67 : vector<1x16x16xf32>
    %cst_20 = arith.constant dense<0.000000e+00> : vector<1x16xf32>
    %69 = vector.multi_reduction <add>, %68, %cst_20 [2] : vector<1x16x16xf32> to vector<1x16xf32>
    %70 = vector.shape_cast %69 : vector<1x16xf32> to vector<1x16x1xf32>
    %71 = tpu.reciprocal %70 {approx = true} : vector<1x16x1xf32> -> vector<1x16x1xf32>
    %72 = vector.broadcast %71 : vector<1x16x1xf32> to vector<1x16x16xf32>
    %73 = arith.mulf %68, %72 : vector<1x16x16xf32>
    %74 = arith.truncf %73 : vector<1x16x16xf32> to vector<1x16x16xbf16>
    "tpu.trace_start"() <{level = 10 : i32, message = "bqk,bkd->bqd"}> : () -> ()
    %cst_21 = arith.constant dense<0.000000e+00> : vector<1x16x32xf32>
    %75 = tpu.matmul %74, %59, %cst_21 {dimension_numbers = #tpu.dot_dimension_numbers<[2], [1], [1], [2], [0, 0, 0, 1, 1, 2], [0], [0]>} : vector<1x16x16xbf16>, vector<1x16x32xbf16>, vector<1x16x32xf32> -> vector<1x16x32xf32>
    "tpu.trace_stop"() : () -> ()
    %76 = vector.shape_cast %75 : vector<1x16x32xf32> to vector<16x32xf32>
    %77 = arith.truncf %76 : vector<16x32xf32> to vector<16x32xbf16>
    %78 = vector.extract_strided_slice %52 {offsets = [0, 0], sizes = [32, 128], strides = [1, 1]} : vector<128x128xbf16> to vector<32x128xbf16>
    %cst_22 = arith.constant dense<0.000000e+00> : vector<16x128xf32>
    %79 = tpu.matmul %77, %78, %cst_22 {dimension_numbers = #tpu.dot_dimension_numbers<[1], [0], [0], [1], [0, 0, 1, 1], [], []>} : vector<16x32xbf16>, vector<32x128xbf16>, vector<16x128xf32> -> vector<16x128xf32>
    %80 = arith.addf %53, %79 : vector<16x128xf32>
    %81 = vector.extract_strided_slice %43 {offsets = [0, 0, 32], sizes = [1, 16, 32], strides = [1, 1, 1]} : vector<1x16x128xf32> to vector<1x16x32xf32>
    %82 = arith.truncf %81 : vector<1x16x32xf32> to vector<1x16x32xbf16>
    %83 = vector.extract_strided_slice %45 {offsets = [0, 0, 32], sizes = [1, 16, 32], strides = [1, 1, 1]} : vector<1x16x128xf32> to vector<1x16x32xf32>
    %84 = arith.truncf %83 : vector<1x16x32xf32> to vector<1x16x32xbf16>
    %85 = vector.extract_strided_slice %47 {offsets = [0, 0, 32], sizes = [1, 16, 32], strides = [1, 1, 1]} : vector<1x16x128xf32> to vector<1x16x32xf32>
    %86 = arith.truncf %85 : vector<1x16x32xf32> to vector<1x16x32xbf16>
    "tpu.trace_start"() <{level = 10 : i32, message = "bqd,bkd->bqk"}> : () -> ()
    %cst_23 = arith.constant dense<0.000000e+00> : vector<1x16x16xf32>
    %87 = tpu.matmul %82, %84, %cst_23 {dimension_numbers = #tpu.dot_dimension_numbers<[2], [2], [1], [1], [0, 0, 0, 1, 1, 1], [0], [0]>} : vector<1x16x32xbf16>, vector<1x16x32xbf16>, vector<1x16x16xf32> -> vector<1x16x16xf32>
    "tpu.trace_stop"() : () -> ()
    %88 = vector.shape_cast %50 : vector<16x16xi1> to vector<1x16x16xi1>
    %cst_24 = arith.constant -1.000000e+30 : f32
    %89 = vector.broadcast %cst_24 : f32 to vector<1x16x16xf32>
    %90 = arith.select %88, %87, %89 : vector<1x16x16xi1>, vector<1x16x16xf32>
    %cst_25 = arith.constant dense<0xFF800000> : vector<1x16xf32>
    %91 = vector.multi_reduction <maximumf>, %90, %cst_25 [2] : vector<1x16x16xf32> to vector<1x16xf32>
    %92 = vector.shape_cast %91 : vector<1x16xf32> to vector<1x16x1xf32>
    %93 = vector.broadcast %92 : vector<1x16x1xf32> to vector<1x16x16xf32>
    %94 = arith.subf %90, %93 : vector<1x16x16xf32>
    %95 = math.exp %94 : vector<1x16x16xf32>
    %cst_26 = arith.constant dense<0.000000e+00> : vector<1x16xf32>
    %96 = vector.multi_reduction <add>, %95, %cst_26 [2] : vector<1x16x16xf32> to vector<1x16xf32>
    %97 = vector.shape_cast %96 : vector<1x16xf32> to vector<1x16x1xf32>
    %98 = tpu.reciprocal %97 {approx = true} : vector<1x16x1xf32> -> vector<1x16x1xf32>
    %99 = vector.broadcast %98 : vector<1x16x1xf32> to vector<1x16x16xf32>
    %100 = arith.mulf %95, %99 : vector<1x16x16xf32>
    %101 = arith.truncf %100 : vector<1x16x16xf32> to vector<1x16x16xbf16>
    "tpu.trace_start"() <{level = 10 : i32, message = "bqk,bkd->bqd"}> : () -> ()
    %cst_27 = arith.constant dense<0.000000e+00> : vector<1x16x32xf32>
    %102 = tpu.matmul %101, %86, %cst_27 {dimension_numbers = #tpu.dot_dimension_numbers<[2], [1], [1], [2], [0, 0, 0, 1, 1, 2], [0], [0]>} : vector<1x16x16xbf16>, vector<1x16x32xbf16>, vector<1x16x32xf32> -> vector<1x16x32xf32>
    "tpu.trace_stop"() : () -> ()
    %103 = vector.shape_cast %102 : vector<1x16x32xf32> to vector<16x32xf32>
    %104 = arith.truncf %103 : vector<16x32xf32> to vector<16x32xbf16>
    %105 = vector.extract_strided_slice %52 {offsets = [32, 0], sizes = [32, 128], strides = [1, 1]} : vector<128x128xbf16> to vector<32x128xbf16>
    %cst_28 = arith.constant dense<0.000000e+00> : vector<16x128xf32>
    %106 = tpu.matmul %104, %105, %cst_28 {dimension_numbers = #tpu.dot_dimension_numbers<[1], [0], [0], [1], [0, 0, 1, 1], [], []>} : vector<16x32xbf16>, vector<32x128xbf16>, vector<16x128xf32> -> vector<16x128xf32>
    %107 = arith.addf %80, %106 : vector<16x128xf32>
    %108 = vector.extract_strided_slice %43 {offsets = [0, 0, 64], sizes = [1, 16, 32], strides = [1, 1, 1]} : vector<1x16x128xf32> to vector<1x16x32xf32>
    %109 = arith.truncf %108 : vector<1x16x32xf32> to vector<1x16x32xbf16>
    %110 = vector.extract_strided_slice %45 {offsets = [0, 0, 64], sizes = [1, 16, 32], strides = [1, 1, 1]} : vector<1x16x128xf32> to vector<1x16x32xf32>
    %111 = arith.truncf %110 : vector<1x16x32xf32> to vector<1x16x32xbf16>
    %112 = vector.extract_strided_slice %47 {offsets = [0, 0, 64], sizes = [1, 16, 32], strides = [1, 1, 1]} : vector<1x16x128xf32> to vector<1x16x32xf32>
    %113 = arith.truncf %112 : vector<1x16x32xf32> to vector<1x16x32xbf16>
    "tpu.trace_start"() <{level = 10 : i32, message = "bqd,bkd->bqk"}> : () -> ()
    %cst_29 = arith.constant dense<0.000000e+00> : vector<1x16x16xf32>
    %114 = tpu.matmul %109, %111, %cst_29 {dimension_numbers = #tpu.dot_dimension_numbers<[2], [2], [1], [1], [0, 0, 0, 1, 1, 1], [0], [0]>} : vector<1x16x32xbf16>, vector<1x16x32xbf16>, vector<1x16x16xf32> -> vector<1x16x16xf32>
    "tpu.trace_stop"() : () -> ()
    %115 = vector.shape_cast %50 : vector<16x16xi1> to vector<1x16x16xi1>
    %cst_30 = arith.constant -1.000000e+30 : f32
    %116 = vector.broadcast %cst_30 : f32 to vector<1x16x16xf32>
    %117 = arith.select %115, %114, %116 : vector<1x16x16xi1>, vector<1x16x16xf32>
    %cst_31 = arith.constant dense<0xFF800000> : vector<1x16xf32>
    %118 = vector.multi_reduction <maximumf>, %117, %cst_31 [2] : vector<1x16x16xf32> to vector<1x16xf32>
    %119 = vector.shape_cast %118 : vector<1x16xf32> to vector<1x16x1xf32>
    %120 = vector.broadcast %119 : vector<1x16x1xf32> to vector<1x16x16xf32>
    %121 = arith.subf %117, %120 : vector<1x16x16xf32>
    %122 = math.exp %121 : vector<1x16x16xf32>
    %cst_32 = arith.constant dense<0.000000e+00> : vector<1x16xf32>
    %123 = vector.multi_reduction <add>, %122, %cst_32 [2] : vector<1x16x16xf32> to vector<1x16xf32>
    %124 = vector.shape_cast %123 : vector<1x16xf32> to vector<1x16x1xf32>
    %125 = tpu.reciprocal %124 {approx = true} : vector<1x16x1xf32> -> vector<1x16x1xf32>
    %126 = vector.broadcast %125 : vector<1x16x1xf32> to vector<1x16x16xf32>
    %127 = arith.mulf %122, %126 : vector<1x16x16xf32>
    %128 = arith.truncf %127 : vector<1x16x16xf32> to vector<1x16x16xbf16>
    "tpu.trace_start"() <{level = 10 : i32, message = "bqk,bkd->bqd"}> : () -> ()
    %cst_33 = arith.constant dense<0.000000e+00> : vector<1x16x32xf32>
    %129 = tpu.matmul %128, %113, %cst_33 {dimension_numbers = #tpu.dot_dimension_numbers<[2], [1], [1], [2], [0, 0, 0, 1, 1, 2], [0], [0]>} : vector<1x16x16xbf16>, vector<1x16x32xbf16>, vector<1x16x32xf32> -> vector<1x16x32xf32>
    "tpu.trace_stop"() : () -> ()
    %130 = vector.shape_cast %129 : vector<1x16x32xf32> to vector<16x32xf32>
    %131 = arith.truncf %130 : vector<16x32xf32> to vector<16x32xbf16>
    %132 = vector.extract_strided_slice %52 {offsets = [64, 0], sizes = [32, 128], strides = [1, 1]} : vector<128x128xbf16> to vector<32x128xbf16>
    %cst_34 = arith.constant dense<0.000000e+00> : vector<16x128xf32>
    %133 = tpu.matmul %131, %132, %cst_34 {dimension_numbers = #tpu.dot_dimension_numbers<[1], [0], [0], [1], [0, 0, 1, 1], [], []>} : vector<16x32xbf16>, vector<32x128xbf16>, vector<16x128xf32> -> vector<16x128xf32>
    %134 = arith.addf %107, %133 : vector<16x128xf32>
    %135 = vector.extract_strided_slice %43 {offsets = [0, 0, 96], sizes = [1, 16, 32], strides = [1, 1, 1]} : vector<1x16x128xf32> to vector<1x16x32xf32>
    %136 = arith.truncf %135 : vector<1x16x32xf32> to vector<1x16x32xbf16>
    %137 = vector.extract_strided_slice %45 {offsets = [0, 0, 96], sizes = [1, 16, 32], strides = [1, 1, 1]} : vector<1x16x128xf32> to vector<1x16x32xf32>
    %138 = arith.truncf %137 : vector<1x16x32xf32> to vector<1x16x32xbf16>
    %139 = vector.extract_strided_slice %47 {offsets = [0, 0, 96], sizes = [1, 16, 32], strides = [1, 1, 1]} : vector<1x16x128xf32> to vector<1x16x32xf32>
    %140 = arith.truncf %139 : vector<1x16x32xf32> to vector<1x16x32xbf16>
    "tpu.trace_start"() <{level = 10 : i32, message = "bqd,bkd->bqk"}> : () -> ()
    %cst_35 = arith.constant dense<0.000000e+00> : vector<1x16x16xf32>
    %141 = tpu.matmul %136, %138, %cst_35 {dimension_numbers = #tpu.dot_dimension_numbers<[2], [2], [1], [1], [0, 0, 0, 1, 1, 1], [0], [0]>} : vector<1x16x32xbf16>, vector<1x16x32xbf16>, vector<1x16x16xf32> -> vector<1x16x16xf32>
    "tpu.trace_stop"() : () -> ()
    %142 = vector.shape_cast %50 : vector<16x16xi1> to vector<1x16x16xi1>
    %cst_36 = arith.constant -1.000000e+30 : f32
    %143 = vector.broadcast %cst_36 : f32 to vector<1x16x16xf32>
    %144 = arith.select %142, %141, %143 : vector<1x16x16xi1>, vector<1x16x16xf32>
    %cst_37 = arith.constant dense<0xFF800000> : vector<1x16xf32>
    %145 = vector.multi_reduction <maximumf>, %144, %cst_37 [2] : vector<1x16x16xf32> to vector<1x16xf32>
    %146 = vector.shape_cast %145 : vector<1x16xf32> to vector<1x16x1xf32>
    %147 = vector.broadcast %146 : vector<1x16x1xf32> to vector<1x16x16xf32>
    %148 = arith.subf %144, %147 : vector<1x16x16xf32>
    %149 = math.exp %148 : vector<1x16x16xf32>
    %cst_38 = arith.constant dense<0.000000e+00> : vector<1x16xf32>
    %150 = vector.multi_reduction <add>, %149, %cst_38 [2] : vector<1x16x16xf32> to vector<1x16xf32>
    %151 = vector.shape_cast %150 : vector<1x16xf32> to vector<1x16x1xf32>
    %152 = tpu.reciprocal %151 {approx = true} : vector<1x16x1xf32> -> vector<1x16x1xf32>
    %153 = vector.broadcast %152 : vector<1x16x1xf32> to vector<1x16x16xf32>
    %154 = arith.mulf %149, %153 : vector<1x16x16xf32>
    %155 = arith.truncf %154 : vector<1x16x16xf32> to vector<1x16x16xbf16>
    "tpu.trace_start"() <{level = 10 : i32, message = "bqk,bkd->bqd"}> : () -> ()
    %cst_39 = arith.constant dense<0.000000e+00> : vector<1x16x32xf32>
    %156 = tpu.matmul %155, %140, %cst_39 {dimension_numbers = #tpu.dot_dimension_numbers<[2], [1], [1], [2], [0, 0, 0, 1, 1, 2], [0], [0]>} : vector<1x16x16xbf16>, vector<1x16x32xbf16>, vector<1x16x32xf32> -> vector<1x16x32xf32>
    "tpu.trace_stop"() : () -> ()
    %157 = vector.shape_cast %156 : vector<1x16x32xf32> to vector<16x32xf32>
    %158 = arith.truncf %157 : vector<16x32xf32> to vector<16x32xbf16>
    %159 = vector.extract_strided_slice %52 {offsets = [96, 0], sizes = [32, 128], strides = [1, 1]} : vector<128x128xbf16> to vector<32x128xbf16>
    %cst_40 = arith.constant dense<0.000000e+00> : vector<16x128xf32>
    %160 = tpu.matmul %158, %159, %cst_40 {dimension_numbers = #tpu.dot_dimension_numbers<[1], [0], [0], [1], [0, 0, 1, 1], [], []>} : vector<16x32xbf16>, vector<32x128xbf16>, vector<16x128xf32> -> vector<16x128xf32>
    %161 = arith.addf %134, %160 : vector<16x128xf32>
    %162 = arith.addf %3, %161 : vector<16x128xf32>
    %163 = vector.broadcast %9 : vector<1x128xf32> to vector<16x128xf32>
    %164 = arith.addf %162, %163 : vector<16x128xf32>
    %cst_41 = arith.constant dense<0.000000e+00> : vector<16xf32>
    %165 = vector.multi_reduction <add>, %164, %cst_41 [1] : vector<16x128xf32> to vector<16xf32>
    %166 = vector.shape_cast %165 : vector<16xf32> to vector<16x1xf32>
    %cst_42 = arith.constant 1.280000e+02 : f32
    %167 = vector.broadcast %cst_42 : f32 to vector<16x1xf32>
    %168 = arith.divf %166, %167 : vector<16x1xf32>
    %169 = vector.broadcast %168 : vector<16x1xf32> to vector<16x128xf32>
    %170 = arith.subf %164, %169 : vector<16x128xf32>
    %171 = arith.mulf %170, %170 : vector<16x128xf32>
    %cst_43 = arith.constant dense<0.000000e+00> : vector<16xf32>
    %172 = vector.multi_reduction <add>, %171, %cst_43 [1] : vector<16x128xf32> to vector<16xf32>
    %173 = vector.shape_cast %172 : vector<16xf32> to vector<16x1xf32>
    %cst_44 = arith.constant 1.280000e+02 : f32
    %174 = vector.broadcast %cst_44 : f32 to vector<16x1xf32>
    %175 = arith.divf %173, %174 : vector<16x1xf32>
    %176 = vector.broadcast %168 : vector<16x1xf32> to vector<16x128xf32>
    %177 = arith.subf %164, %176 : vector<16x128xf32>
    %cst_45 = arith.constant 9.99999974E-6 : f32
    %178 = vector.broadcast %cst_45 : f32 to vector<16x1xf32>
    %179 = arith.addf %175, %178 : vector<16x1xf32>
    %180 = math.rsqrt %179 : vector<16x1xf32>
    %181 = vector.broadcast %180 : vector<16x1xf32> to vector<16x128xf32>
    %182 = arith.mulf %177, %181 : vector<16x128xf32>
    %183 = vector.broadcast %10 : vector<1x128xf32> to vector<16x128xf32>
    %184 = arith.mulf %182, %183 : vector<16x128xf32>
    %185 = vector.broadcast %11 : vector<1x128xf32> to vector<16x128xf32>
    %186 = arith.addf %184, %185 : vector<16x128xf32>
    %187 = arith.truncf %186 : vector<16x128xf32> to vector<16x128xbf16>
    %c0_46 = arith.constant 0 : index
    %c0_47 = arith.constant 0 : index
    %c0_48 = arith.constant 0 : index
    %188 = vector.load %arg8[%c0_46, %c0_47, %c0_48] : memref<1x128x256xbf16, #tpu.memory_space<vmem>>, vector<1x128x256xbf16>
    %189 = vector.shape_cast %188 : vector<1x128x256xbf16> to vector<128x256xbf16>
    %cst_49 = arith.constant dense<0.000000e+00> : vector<16x256xf32>
    %190 = tpu.matmul %187, %189, %cst_49 {dimension_numbers = #tpu.dot_dimension_numbers<[1], [0], [0], [1], [0, 0, 1, 1], [], []>} : vector<16x128xbf16>, vector<128x256xbf16>, vector<16x256xf32> -> vector<16x256xf32>
    %191 = vector.broadcast %12 : vector<1x256xf32> to vector<16x256xf32>
    %192 = arith.addf %190, %191 : vector<16x256xf32>
    %193 = arith.mulf %192, %192 : vector<16x256xf32>
    %194 = arith.mulf %192, %193 : vector<16x256xf32>
    %cst_50 = arith.constant 4.471500e-02 : f32
    %195 = vector.broadcast %cst_50 : f32 to vector<16x256xf32>
    %196 = arith.mulf %195, %194 : vector<16x256xf32>
    %197 = arith.addf %192, %196 : vector<16x256xf32>
    %cst_51 = arith.constant 0.797884583 : f32
    %198 = vector.broadcast %cst_51 : f32 to vector<16x256xf32>
    %199 = arith.mulf %198, %197 : vector<16x256xf32>
    %200 = math.tanh %199 : vector<16x256xf32>
    %cst_52 = arith.constant 1.000000e+00 : f32
    %201 = vector.broadcast %cst_52 : f32 to vector<16x256xf32>
    %202 = arith.addf %201, %200 : vector<16x256xf32>
    %cst_53 = arith.constant 5.000000e-01 : f32
    %203 = vector.broadcast %cst_53 : f32 to vector<16x256xf32>
    %204 = arith.mulf %203, %202 : vector<16x256xf32>
    %205 = arith.mulf %192, %204 : vector<16x256xf32>
    %206 = arith.truncf %205 : vector<16x256xf32> to vector<16x256xbf16>
    %c0_54 = arith.constant 0 : index
    %c0_55 = arith.constant 0 : index
    %c0_56 = arith.constant 0 : index
    %207 = vector.load %arg9[%c0_54, %c0_55, %c0_56] : memref<1x256x128xbf16, #tpu.memory_space<vmem>>, vector<1x256x128xbf16>
    %208 = vector.shape_cast %207 : vector<1x256x128xbf16> to vector<256x128xbf16>
    %cst_57 = arith.constant dense<0.000000e+00> : vector<16x128xf32>
    %209 = tpu.matmul %206, %208, %cst_57 {dimension_numbers = #tpu.dot_dimension_numbers<[1], [0], [0], [1], [0, 0, 1, 1], [], []>} : vector<16x256xbf16>, vector<256x128xbf16>, vector<16x128xf32> -> vector<16x128xf32>
    %210 = vector.broadcast %13 : vector<1x128xf32> to vector<16x128xf32>
    %211 = arith.addf %209, %210 : vector<16x128xf32>
    %212 = arith.addf %164, %211 : vector<16x128xf32>
    %c0_58 = arith.constant 0 : index
    %c0_59 = arith.constant 0 : index
    %213 = vector.load %arg15[%c0_58, %c0_59] : memref<16x128xf32, #tpu.memory_space<vmem>>, vector<16x128xf32>
    tpu.vector_store %arg15[%c0_58, %c0_59], %212 {strides = array<i32>} : memref<16x128xf32, #tpu.memory_space<vmem>>, vector<16x128xf32>,
    %c1_i32 = arith.constant 1 : i32
    %214 = arith.cmpi eq, %arg1, %c1_i32 : i32
    %215 = arith.extui %214 : i1 to i32
    %c0_i32_60 = arith.constant 0 : i32
    %216 = arith.cmpi ne, %215, %c0_i32_60 : i32
    scf.if %216 {
      %217 = vector.shape_cast %212 : vector<16x128xf32> to vector<1x16x128xf32>
      %218 = vector.extract_strided_slice %217 {offsets = [0, 0, 0], sizes = [1, 1, 128], strides = [1, 1, 1]} : vector<1x16x128xf32> to vector<1x1x128xf32>
      %219 = vector.shape_cast %218 : vector<1x1x128xf32> to vector<1x128xf32>
      %c0_61 = arith.constant 0 : index
      %c0_62 = arith.constant 0 : index
      %220 = vector.load %arg10[%c0_61, %c0_62] : memref<1x128xf32, #tpu.memory_space<vmem>>, vector<1x128xf32>
      %c0_63 = arith.constant 0 : index
      %c0_64 = arith.constant 0 : index
      %221 = vector.load %arg11[%c0_63, %c0_64] : memref<1x128xf32, #tpu.memory_space<vmem>>, vector<1x128xf32>
      %cst_65 = arith.constant dense<0.000000e+00> : vector<1xf32>
      %222 = vector.multi_reduction <add>, %219, %cst_65 [1] : vector<1x128xf32> to vector<1xf32>
      %223 = vector.shape_cast %222 : vector<1xf32> to vector<1x1xf32>
      %cst_66 = arith.constant 1.280000e+02 : f32
      %224 = vector.broadcast %cst_66 : f32 to vector<1x1xf32>
      %225 = arith.divf %223, %224 : vector<1x1xf32>
      %226 = vector.broadcast %225 : vector<1x1xf32> to vector<1x128xf32>
      %227 = arith.subf %219, %226 : vector<1x128xf32>
      %228 = arith.mulf %227, %227 : vector<1x128xf32>
      %cst_67 = arith.constant dense<0.000000e+00> : vector<1xf32>
      %229 = vector.multi_reduction <add>, %228, %cst_67 [1] : vector<1x128xf32> to vector<1xf32>
      %230 = vector.shape_cast %229 : vector<1xf32> to vector<1x1xf32>
      %cst_68 = arith.constant 1.280000e+02 : f32
      %231 = vector.broadcast %cst_68 : f32 to vector<1x1xf32>
      %232 = arith.divf %230, %231 : vector<1x1xf32>
      %233 = vector.broadcast %225 : vector<1x1xf32> to vector<1x128xf32>
      %234 = arith.subf %219, %233 : vector<1x128xf32>
      %cst_69 = arith.constant 9.99999974E-6 : f32
      %235 = vector.broadcast %cst_69 : f32 to vector<1x1xf32>
      %236 = arith.addf %232, %235 : vector<1x1xf32>
      %237 = math.rsqrt %236 : vector<1x1xf32>
      %238 = vector.broadcast %237 : vector<1x1xf32> to vector<1x128xf32>
      %239 = arith.mulf %234, %238 : vector<1x128xf32>
      %240 = arith.mulf %239, %220 : vector<1x128xf32>
      %241 = arith.addf %240, %221 : vector<1x128xf32>
      %242 = arith.truncf %241 : vector<1x128xf32> to vector<1x128xbf16>
      %c0_70 = arith.constant 0 : index
      %c0_71 = arith.constant 0 : index
      %243 = vector.load %arg12[%c0_70, %c0_71] : memref<128x128xbf16, #tpu.memory_space<vmem>>, vector<128x128xbf16>
      %cst_72 = arith.constant dense<0.000000e+00> : vector<1x128xf32>
      %244 = tpu.matmul %242, %243, %cst_72 {dimension_numbers = #tpu.dot_dimension_numbers<[1], [0], [0], [1], [0, 0, 1, 1], [], []>} : vector<1x128xbf16>, vector<128x128xbf16>, vector<1x128xf32> -> vector<1x128xf32>
      %c0_73 = arith.constant 0 : index
      %c0_74 = arith.constant 0 : index
      %245 = vector.load %arg13[%c0_73, %c0_74] : memref<1x128xf32, #tpu.memory_space<vmem>>, vector<1x128xf32>
      %246 = arith.addf %244, %245 : vector<1x128xf32>
      %c0_75 = arith.constant 0 : index
      %c0_76 = arith.constant 0 : index
      %c0_77 = arith.constant 0 : index
      %247 = vector.load %arg14[%c0_75, %c0_76, %c0_77] : memref<1x1x128xf32, #tpu.memory_space<vmem>>, vector<1x1x128xf32>
      %248 = vector.shape_cast %247 : vector<1x1x128xf32> to vector<1x128xf32>
      %249 = vector.shape_cast %246 : vector<1x128xf32> to vector<1x1x128xf32>
      tpu.vector_store %arg14[%c0_75, %c0_76, %c0_77], %249 {strides = array<i32>} : memref<1x1x128xf32, #tpu.memory_space<vmem>>, vector<1x1x128xf32>,
    } else {
    }
    return
  }
  func.func @transform_0(%arg0: i32, %arg1: i32) -> (i32, i32) {
    %c0_i32 = arith.constant 0 : i32
    %c0_i32_0 = arith.constant 0 : i32
    return %arg0, %c0_i32 : i32, i32
  }
  func.func @transform_1(%arg0: i32, %arg1: i32) -> (i32, i32) {
    %c0_i32 = arith.constant 0 : i32
    %c0_i32_0 = arith.constant 0 : i32
    %c0_i32_1 = arith.constant 0 : i32
    return %c0_i32, %c0_i32_0 : i32, i32
  }
  func.func @transform_2(%arg0: i32, %arg1: i32) -> (i32, i32) {
    %c0_i32 = arith.constant 0 : i32
    %c0_i32_0 = arith.constant 0 : i32
    %c0_i32_1 = arith.constant 0 : i32
    return %c0_i32, %c0_i32_0 : i32, i32
  }
  func.func @transform_3(%arg0: i32, %arg1: i32) -> (i32, i32, i32) {
    %c0_i32 = arith.constant 0 : i32
    %c0_i32_0 = arith.constant 0 : i32
    %c0_i32_1 = arith.constant 0 : i32
    return %arg1, %c0_i32, %c0_i32_0 : i32, i32, i32
  }
  func.func @transform_4(%arg0: i32, %arg1: i32) -> (i32, i32, i32) {
    %c0_i32 = arith.constant 0 : i32
    %c0_i32_0 = arith.constant 0 : i32
    %c0_i32_1 = arith.constant 0 : i32
    return %arg1, %c0_i32, %c0_i32_0 : i32, i32, i32
  }
  func.func @transform_5(%arg0: i32, %arg1: i32) -> (i32, i32, i32) {
    %c0_i32 = arith.constant 0 : i32
    %c0_i32_0 = arith.constant 0 : i32
    %c0_i32_1 = arith.constant 0 : i32
    return %arg1, %c0_i32, %c0_i32_0 : i32, i32, i32
  }
  func.func @transform_6(%arg0: i32, %arg1: i32) -> (i32, i32, i32) {
    %c0_i32 = arith.constant 0 : i32
    %c0_i32_0 = arith.constant 0 : i32
    %c0_i32_1 = arith.constant 0 : i32
    return %arg1, %c0_i32, %c0_i32_0 : i32, i32, i32
  }
  func.func @transform_7(%arg0: i32, %arg1: i32) -> (i32, i32, i32) {
    %c0_i32 = arith.constant 0 : i32
    %c0_i32_0 = arith.constant 0 : i32
    %c0_i32_1 = arith.constant 0 : i32
    return %arg1, %c0_i32, %c0_i32_0 : i32, i32, i32
  }
  func.func @transform_8(%arg0: i32, %arg1: i32) -> (i32, i32) {
    %c0_i32 = arith.constant 0 : i32
    %c0_i32_0 = arith.constant 0 : i32
    %c0_i32_1 = arith.constant 0 : i32
    return %c0_i32, %c0_i32_0 : i32, i32
  }
  func.func @transform_9(%arg0: i32, %arg1: i32) -> (i32, i32) {
    %c0_i32 = arith.constant 0 : i32
    %c0_i32_0 = arith.constant 0 : i32
    %c0_i32_1 = arith.constant 0 : i32
    return %c0_i32, %c0_i32_0 : i32, i32
  }
  func.func @transform_10(%arg0: i32, %arg1: i32) -> (i32, i32) {
    %c0_i32 = arith.constant 0 : i32
    %c0_i32_0 = arith.constant 0 : i32
    %c0_i32_1 = arith.constant 0 : i32
    return %c0_i32, %c0_i32_0 : i32, i32
  }
  func.func @transform_11(%arg0: i32, %arg1: i32) -> (i32, i32) {
    %c0_i32 = arith.constant 0 : i32
    %c0_i32_0 = arith.constant 0 : i32
    %c0_i32_1 = arith.constant 0 : i32
    return %c0_i32, %c0_i32_0 : i32, i32
  }
  func.func @transform_12(%arg0: i32, %arg1: i32) -> (i32, i32, i32) {
    %c0_i32 = arith.constant 0 : i32
    %c0_i32_0 = arith.constant 0 : i32
    %c0_i32_1 = arith.constant 0 : i32
    return %arg0, %c0_i32, %c0_i32_0 : i32, i32, i32
  }
}

</mosaic_0001>

<bundles_post_ra>
// kernel: vit_forward.1
= control target key start
LH: loop header
LB: loop body
LE: loop exit
PB: predicated region body
PF: predicated region fallthrough
CT: control target
= control target key end

     0   :  { %s3691_s0 = inlined_call_operand.vmem [shape: bf16[32,256], index: 0, kind: input, shape index: {}]   ;;  %s3692_s1 = inlined_call_operand.vmem [shape: bf16[256,128], index: 1, kind: input, shape index: {}]   ;;  %s3693_s2 = inlined_call_operand.vmem [shape: f32[16,128], index: 2, kind: input, shape index: {}]   ;;  %s3694_s3 = inlined_call_operand.vmem [shape: f32[2,8,384], index: 3, kind: input, shape index: {}]   ;;  %s3695_s4 = inlined_call_operand.vmem [shape: bf16[2,128,384], index: 4, kind: input, shape index: {}]   ;;  %s3696_s5 = inlined_call_operand.vmem [shape: bf16[2,128,128], index: 5, kind: input, shape index: {}]   ;;  %s3697_s6 = inlined_call_operand.vmem [shape: bf16[2,128,256], index: 6, kind: input, shape index: {}]   ;;  %s3698_s7 = inlined_call_operand.vmem [shape: bf16[2,256,128], index: 7, kind: input, shape index: {}]   ;;  %s3699_s8 = inlined_call_operand.vmem [shape: f32[1,128], index: 8, kind: input, shape index: {}]   ;;  %s3700_s9 = inlined_call_operand.vmem [shape: f32[1,128], index: 9, kind: input, shape index: {}]   ;;  %s3701_s10 = inlined_call_operand.vmem [shape: bf16[128,128], index: 10, kind: input, shape index: {}]   ;;  %s3702_s11 = inlined_call_operand.vmem [shape: f32[1,128], index: 11, kind: input, shape index: {}]   ;;  %s3703_s12 = inlined_call_operand.hbm [shape: f32[2,1,128], index: 12, kind: output, shape index: {}]  }
   0x1   :  { %3716 = sst [smem:[#allocation17_spill]] %s3691_s0 }
   0x2   :  { %3717 = sst [smem:[#allocation18_spill]] %s3702_s11 }
   0x3   :  { %3718 = sst [smem:[#allocation19_spill]] %s3703_s12 }
   0x4   :  { %17 = vsyncpa [#allocation4], 0 }
   0x5   :  { %19 = vsyncpa [#allocation4 + $0x1], 0  ;;  %s3179_s21 = smov 0   ;;  %s3181_s22 = smov 0  }
   0x6   :  { %s3183_s23 = smov 0   ;;  %s3185_s24 = smov 0  }
   0x7   :  { %s3187_s25 = smov 0   ;;  %s3189_s26 = smov 0  }
   0x8   :  { %s3191_s27 = smov 0   ;;  %s3193_s28 = smov 0  }
   0x9 LB: > { %3719 = sst [smem:[#allocation6_spill]] %s3075_s21  ;;  %s2434_s29 = sadd.s32 4294967295, %s3103_s28   ;;  %s3103_s28 = sphi %s3193_s28, %s25_s28   ;;  %s3099_s27 = sphi %s3191_s27, %s3747_s27   ;;  %s3095_s26 = sphi %s3189_s26, %s3746_s26   ;;  %s3091_s25 = sphi %s3187_s25, %s3745_s25   ;;  %s3087_s24 = sphi %s3185_s24, %s3744_s24   ;;  %s3083_s23 = sphi %s3183_s23, %s3750_s23   ;;  %s3079_s22 = sphi %s3181_s22, %s3749_s22   ;;  %s3075_s21 = sphi %s3179_s21, %s3748_s21  }
   0xa   : > { %3720 = sst [smem:[#allocation7_spill]] %s3083_s23  ;;  %s2435_s30 = sadd.s32 4294967294, %s3103_s28  }
   0xb   : > { %3721 = sst [smem:[#allocation8_spill]] %s3091_s25  ;;  %s34_s13 = sadd.s32 1, %s3095_s26 }
   0xc   : > { %3722 = sst [smem:[#allocation9_spill]] %s3095_s26  ;;  %p35_p0 = scmp.ge.s32.totalorder %s34_s13, 2 }
   0xd   : > { %3723 = sst [smem:[#allocation10_spill]] %s3099_s27  ;;  %s37_s14 = sadd.s32 1, %s3099_s27 }
   0xe   : > { %3724 = sst [smem:[#allocation11_spill]] %s3103_s28  ;;  %p336_p1 = scmp.ne.s32.totalorder %s3083_s23, %s3079_s22 }
   0xf   : > { %p337_p2 = scmp.eq.s32.totalorder %s2434_s29, 3  ;;  %s3752_s13 = smov (%p35_p0, %s34_s13), 0 }
  0x10   : > { %3725 = sst [smem:[#allocation12_spill]] %s3752_s13  ;;  %s3754_s14 = smov (!%p35_p0, %s37_s14), %s3099_s27 }
  0x11   : > { %p3228_p3 = por %p337_p2, %p336_p1  ;;  %p342_p4 = scmp.ne.s32.totalorder %s3079_s22, %s3075_s21 }
  0x12   : > { %p39_p5 = scmp.ge.s32.totalorder %s3754_s14, 2  ;;  %p343_p6 = scmp.eq.s32.totalorder %s2435_s30, 3 }
  0x13   : > { %s3726_s15 = scalar_select %p3228_p3, 1, 0 }
  0x14   : > { %p2438_p7 = scmp.ge.s32.totalorder %s3103_s28, 1  ;;  %p429_p8 = scmp.lt.s32.totalorder %s3103_s28, 5 }
  0x15   : > { %3727 = sst [smem:[#allocation13_spill]] %s3726_s15  ;;  %s3756_s14 = smov (%p39_p5, %s3754_s14), 0 }
  0x16   : > { %3728 = sst [smem:[#allocation14_spill]] %s3756_s14  ;;  %p3238_p9 = por %p343_p6, %p342_p4 }
  0x17   : > { %p430_p10 = pnand %p2438_p7, %p429_p8  ;;  %s323_s17 = ssub.s32 %s3099_s27, %s3756_s14 }
  0x18   : > { %s3729_s16 = scalar_select %p3238_p9, 1, 0 }
  0x19   : > { %s326_s18 = sadd.s32 1, %s3083_s23  ;;  %p324_p11 = scmp.eq.s32.totalorder %s323_s17, 0 }
  0x1a   : > { %3730 = sst [smem:[#allocation15_spill]] %s3729_s16  ;;  %433 = sbr.rel (%p430_p10) target bundleno = 4552 (0x11c8), region = 68 }
  0x1b   : > { %s3246_s19 = scalar_select %p324_p11, %s3083_s23, %s326_s18  }
  0x1c   : > { %s2439_s29 = sshll.u32 (!%p430_p10), %s3091_s25, 1  ;;  %p503_p13 = scmp.lt.s32.totalorder (!%p430_p10), %s3087_s24, 1 }
  0x1d   : > { %3731 = sst [smem:[#allocation16_spill]] %s3246_s19  ;;  %p497_p12 = scmp.lt.s32.totalorder (!%p430_p10), %s2439_s29, 3 }
  0x1e   : > { %s3732_s0 = sld [smem:[#allocation17_spill]] (!%p430_p10)  ;;  %p2450_p0 = scmp.ne.s32.totalorder (!%p430_p10), %s3087_s24, 0 }
  0x21   : > { %s3758_s29 = smov (!%p497_p12, %s2439_s29), 3  ;;  %v2852_v0 = vld [vmem:[%s3692_s1 + $0x40] sm:$0xff] (!%p2450_p0)   ;;  %v2854_v2 = vld [vmem:[%s3692_s1 + $0x48] sm:$0xff] (!%p2450_p0)   ;;  %v2856_v4 = vld [vmem:[%s3692_s1 + $0x50] sm:$0xff] (!%p2450_p0)  }
  0x22   : > { %s504_s30 = scalar_select %p503_p13, %s3087_s24, 1 }
  0x23   : > { %s2557_s13 = sshll.u32 %s3758_s29, 3  ;;  %v2853_v1 = vld [vmem:[%s3692_s1] sm:$0xff] (!%p2450_p0)   ;;  %2561 = vmatprep.subr.bf16.mxu0 (!%p2450_p0), %v2852_v0  ;;  %v2855_v3 = vld [vmem:[%s3692_s1 + $0x8] sm:$0xff] (!%p2450_p0)   ;;  %v2857_v5 = vld [vmem:[%s3692_s1 + $0x10] sm:$0xff] (!%p2450_p0)  }
  0x24   : > { %s3255_s14 = scalar_lea.vmem %s3732_s0, %s2557_s13  ;;  %s2771_s17 = smul.u32 24, %s504_s30  ;;  %2562 = vmatpush3.bf16.msra.mxu0 (!%p2450_p0), %v2853_v1  ;;  %v2858_v6 = vld [vmem:[%s3692_s1 + $0x58] sm:$0xff] (!%p2450_p0)   ;;  %v2860_v8 = vld [vmem:[%s3692_s1 + $0x60] sm:$0xff] (!%p2450_p0)   ;;  %v2862_v10 = vld [vmem:[%s3692_s1 + $0x68] sm:$0xff] (!%p2450_p0)  }
  0x25   : > { %s2772_s18 = smul.u32 192, %s504_s30  ;;  %s2558_s27 = sshll.u32 %s504_s30, 6  ;;  %2563 = vmatprep.subr.bf16.mxu0 (!%p2450_p0), %v2854_v2  ;;  %v2859_v7 = vld [vmem:[%s3692_s1 + $0x18] sm:$0xff] (!%p2450_p0)   ;;  %v2861_v9 = vld [vmem:[%s3692_s1 + $0x20] sm:$0xff] (!%p2450_p0)   ;;  %v2863_v12 = vld [vmem:[%s3692_s1 + $0x28] sm:$0xff] (!%p2450_p0)  }
  0x26   : > { %s3260_s21 = scalar_lea.vmem %s3694_s3, %s2771_s17  ;;  %s3265_s12 = scalar_lea.vmem %s3696_s5, %s2558_s27  ;;  %v2870_v11 = vld [vmem:[%s3255_s14 + $0x4] ss:$8 sps:$4 sm:$0xff] (!%p2450_p0)   ;;  %v2864_v13 = vld [vmem:[%s3692_s1 + $0x70] sm:$0xff] (!%p2450_p0)   ;;  %v2866_v15 = vld [vmem:[%s3692_s1 + $0x78] sm:$0xff] (!%p2450_p0)  }
  0x27   : > { %s3270_s25 = scalar_lea.vmem %s3695_s4, %s2772_s18  ;;  %s2559_s26 = sshll.u32 %s504_s30, 7  ;;  %705 = vmatprep.mubr.bf16.mxu0 (!%p2450_p0), %v2870_v11  ;;  %v2865_v14 = vld [vmem:[%s3692_s1 + $0x30] sm:$0xff] (!%p2450_p0)   ;;  %v2867_v16 = vld [vmem:[%s3692_s1 + $0x38] sm:$0xff] (!%p2450_p0)   ;;  %v2868_v17 = vld [vmem:[%s3255_s14] ss:$8 sps:$4 sm:$0xff] (!%p2450_p0)  }
  0x28   : > { %s3275_s0 = scalar_lea.vmem %s3697_s6, %s2559_s26  ;;  %s3280_s19 = scalar_lea.vmem %s3698_s7, %s2559_s26  ;;  %2564 = vmatpush3.bf16.msra.mxu0 (!%p2450_p0), %v2855_v3  ;;  %v714_v20 = vld [vmem:[%s3693_s2] sm:$0xff] (!%p2450_p0)  ;;  %v715_v24 = vld [vmem:[%s3693_s2 + $0x8] sm:$0xff] (!%p2450_p0) }
  0x29   : > { %s3733_s17 = sand.u32 1, %s3079_s22   ;;  %532 = sbr.rel (%p2450_p0) target bundleno = 287 (0x11f), region = 72  ;;  %2565 = vmatprep.subr.bf16.mxu0 (!%p2450_p0), %v2856_v4 }
  0x2a   : > { %s3284_s28 = scalar_lea.vmem [#allocation3], %s3733_s17 }
  0x2c   : > { %2566 = vmatpush3.bf16.msra.mxu0 (!%p2450_p0), %v2857_v5 }
  0x2d   : > { %2567 = vmatprep.subr.bf16.mxu0 (!%p2450_p0), %v2858_v6 }
  0x30   : > { %2568 = vmatpush3.bf16.msra.mxu0 %v2859_v7 }
  0x31   : > { %2569 = vmatprep.subr.bf16.mxu0 %v2860_v8 }
  0x34   : > { %2570 = vmatpush3.bf16.msra.mxu0 %v2861_v9 }
  0x35   : > { %2571 = vmatprep.subr.bf16.mxu0 %v2862_v10 }
  0x38   : > { %2572 = vmatpush3.bf16.msra.mxu0 %v2863_v12 }
  0x39   : > { %2573 = vmatprep.subr.bf16.mxu0 %v2864_v13 }
  0x3c   : > { %2574 = vmatpush3.bf16.msra.mxu0 %v2865_v14 }
  0x3d   : > { %2575 = vmatprep.subr.bf16.mxu0 %v2866_v15 }
  0x40   : > { %2576 = vmatpush3.bf16.msra.mxu0 %v2867_v16 }
  0x43   : > { %706 = vmatmul.mubr.bf16.vlgmr.msra.gmra.mrb[0].mxu0 %v2868_v17 }
 0x116   : > { %v2577_v18 = vpop.f32.mrb[0].mxu0 }
 0x117   : > { %v2578_v19 = vpop.f32.mrb[1].mxu0 }
 0x118   : > { %v2579_v21 = vadd.f32 %v2578_v19, %v2577_v18  ;;  %v2580_v22 = vpop.f32.mrb[2].mxu0 }
 0x119   : > { %v2581_v23 = vpop.f32.mrb[3].mxu0 }
 0x11a   : > { %v716_v25 = vadd.f32 %v2579_v21, %v714_v20  ;;  %v2582_v26 = vadd.f32 %v2581_v23, %v2580_v22 }
 0x11c   : > { %718 = vst [vmem:[#allocation2] sm:$0xff] %v716_v25  ;;  %v717_v27 = vadd.f32 %v2582_v26, %v715_v24 }
 0x11e   : > { %719 = vst [vmem:[#allocation2 + $0x8] sm:$0xff] %v717_v27 }
 0x11f PF: > { %v2871_v30 = vld [vmem:[%s3270_s25 + $0x4] ss:$12 sps:$4 sm:$0xff]   ;;  %v2873_v31 = vld [vmem:[%s3270_s25] ss:$12 sps:$4 sm:$0xff]   ;;  %v3105_v32 = vmov 0.0   ;;  %v3106_v58 = vmov 0   ;;  %v748_v4 = vlaneseq }
 0x120   : > { %2651 = vmatprep.subr.bf16.mxu1 %v3105_v32  ;;  %v2874_v33 = vld [vmem:[%s3270_s25 + $0x8] ss:$12 sps:$4 sm:$0xff]   ;;  %933 = vmatprep.subr.bf16.mxu0 %v2871_v30  ;;  %v2877_v43 = vld [vmem:[%s3270_s25 + $0x18] ss:$12 sps:$4 sm:$0xff]   ;;  %v2878_v44 = vld [vmem:[%s3270_s25 + $0x20] ss:$12 sps:$4 sm:$0xff]  }
 0x121   : > { %v2875_v34 = vld [vmem:[%s3270_s25 + $0x1c] ss:$12 sps:$4 sm:$0xff]   ;;  %934 = vmatpush1.bf16.msra.mxu0 %v2873_v31  ;;  %2652 = vmatpush3.bf16.msra.mxu1 %v2874_v33  ;;  %v2879_v45 = vld [vmem:[%s3270_s25 + $0x34] ss:$12 sps:$4 sm:$0xff]   ;;  %v2882_v47 = vld [vmem:[%s3270_s25 + $0x38] ss:$12 sps:$4 sm:$0xff]  }
 0x122   : > { %935 = vmatprep.subr.bf16.mxu0 %v2875_v34  ;;  %2653 = vmatprep.subr.bf16.mxu1 %v3105_v32  ;;  %v2881_v46 = vld [vmem:[%s3270_s25 + $0x30] ss:$12 sps:$4 sm:$0xff]   ;;  %v2883_v48 = vld [vmem:[%s3270_s25 + $0x4c] ss:$12 sps:$4 sm:$0xff]   ;;  %v2885_v49 = vld [vmem:[%s3270_s25 + $0x48] ss:$12 sps:$4 sm:$0xff]  }
 0x123   : > { %v3343_v28 = vld [vmem:[#allocation2] sm:$0xff]  ;;  %v2886_v50 = vld [vmem:[%s3270_s25 + $0x50] ss:$12 sps:$4 sm:$0xff]   ;;  %v2890_v53 = vld [vmem:[%s3270_s25 + $0x68] ss:$12 sps:$4 sm:$0xff]   ;;  %965 = vmatprep.mubr.bf16.mxu0 %v3106_v58  ;;  %vm3107_vm0 = vmmov 0  }
 0x124   : > { %725 = vadd.xlane.f32.xlu0 %v3343_v28  ;;  %v2887_v51 = vld [vmem:[%s3270_s25 + $0x64] ss:$12 sps:$4 sm:$0xff]   ;;  %v2889_v52 = vld [vmem:[%s3270_s25 + $0x60] ss:$12 sps:$4 sm:$0xff]   ;;  %v2891_v54 = vld [vmem:[%s3270_s25 + $0x7c] ss:$12 sps:$4 sm:$0xff]   ;;  %2667 = vmatprep.mubr.msk.bf16.mxu1 %vm3107_vm0, %v3105_v32 }
 0x125   : > { %v3345_v29 = vld [vmem:[#allocation2 + $0x8] sm:$0xff]  ;;  %936 = vmatpush1.bf16.msra.mxu0 %v2877_v43  ;;  %2654 = vmatpush3.bf16.msra.mxu1 %v2878_v44  ;;  %v2893_v55 = vld [vmem:[%s3270_s25 + $0x78] ss:$12 sps:$4 sm:$0xff]   ;;  %v2895_v57 = vld [vmem:[%s3270_s25 + $0x94] ss:$12 sps:$4 sm:$0xff]   ;;  %v3397_v7 = vshrl.u32 %v748_v4, 7 }
 0x126   : > { %2655 = vmatprep.subr.bf16.mxu1 %v3105_v32  ;;  %937 = vmatprep.subr.bf16.mxu0 %v2879_v45  ;;  %v2894_v56 = vld [vmem:[%s3270_s25 + $0x80] ss:$12 sps:$4 sm:$0xff]   ;;  %v2897_v59 = vld [vmem:[%s3270_s25 + $0x90] ss:$12 sps:$4 sm:$0xff]   ;;  %v2898_v60 = vld [vmem:[%s3270_s25 + $0x98] ss:$12 sps:$4 sm:$0xff]  }
 0x127   : > { %v2899_v61 = vld [vmem:[%s3270_s25 + $0xac] ss:$12 sps:$4 sm:$0xff]   ;;  %v2901_v62 = vld [vmem:[%s3270_s25 + $0xa8] ss:$12 sps:$4 sm:$0xff]   ;;  %v2902_v63 = vld [vmem:[%s3270_s25 + $0xb0] ss:$12 sps:$4 sm:$0xff]  }
 0x128   : > { %727 = vadd.xlane.f32.xlu0 %v3345_v29  ;;  %v750_v8 = vsub.s32 0, %v3397_v7  ;;  %v3401_v9 = vld [vmem:[%s3260_s21] sm:$0xff]  ;;  %v756_v13 = vsub.s32 1, %v3397_v7  ;;  %v795_v22 = vsub.s32 2, %v3397_v7  ;;  %v724_v23 = vld [vmem:[%s3260_s21 + $0x10] sm:$0xff]  ;;  %v3415_v24 = vld [vmem:[%s3260_s21 + $0x8] sm:$0xff] }
 0x129   : > { %938 = vmatpush1.bf16.msra.mxu0 %v2881_v46  ;;  %2656 = vmatpush3.bf16.msra.mxu1 %v2882_v47  ;;  %vm1039_vm1 = vcmask 261120   ;;  %s3108_s21 = smov 96   ;;  %vm1089_vm3 = vcmask 130048   ;;  %s3109_s25 = smov 64  }
 0x12a   : > { %2657 = vmatprep.subr.bf16.mxu1 %v3105_v32  ;;  %939 = vmatprep.subr.bf16.mxu0 %v2883_v48  ;;  %v751_v12 = vrot.slane %v3401_v9, %v750_v8  ;;  %v757_v17 = vrot.slane %v3401_v9, %v756_v13  ;;  %v796_v25 = vrot.slane %v3401_v9, %v795_v22  ;;  %s3110_s14 = smov 32   ;;  %p2545_p1 = scmp.ne.s32.totalorder %s3087_s24, 1 }
 0x12b   : > { %v804_v26 = vrot.slane %v724_v23, %v795_v22  ;;  %v800_v31 = vrot.slane %v3415_v24, %v795_v22  ;;  %vm2172_vm4 = vcmask (!%p2545_p1), 1040384   ;;  %vm3112_vm5 = vmmov (!%p2545_p1), 0   ;;  %s3734_s27 = sld [smem:[#allocation18_spill]] (!%p2545_p1) }
 0x12d   : > { %940 = vmatpush1.bf16.msra.mxu0 %v2885_v49  ;;  %2658 = vmatpush3.bf16.msra.mxu1 %v2886_v50 }
 0x12e   : > { %2659 = vmatprep.subr.bf16.mxu1 %v3105_v32  ;;  %941 = vmatprep.subr.bf16.mxu0 %v2887_v51 }
 0x131   : > { %942 = vmatpush1.bf16.msra.mxu0 %v2889_v52  ;;  %2660 = vmatpush3.bf16.msra.mxu1 %v2890_v53  ;;  %v3444_v52 = vand.u32 127, %v748_v4 }
 0x132   : > { %943 = vmatprep.subr.bf16.mxu0 %v2891_v54  ;;  %2661 = vmatprep.subr.bf16.mxu1 %v3105_v32 }
 0x133   : > { %vm1019_vm2 = vcmp.lt.s32.totalorder %v3444_v52, 5 }
 0x135   : > { %944 = vmatpush1.bf16.msra.mxu0 %v2893_v55  ;;  %2662 = vmatpush3.bf16.msra.mxu1 %v2894_v56 }
 0x136   : > { %945 = vmatprep.subr.bf16.mxu0 %v2895_v57  ;;  %2663 = vmatprep.subr.bf16.mxu1 %v3105_v32 }
 0x139   : > { %946 = vmatpush1.bf16.msra.mxu0 %v2897_v59  ;;  %2664 = vmatpush3.bf16.msra.mxu1 %v2898_v60 }
 0x13a   : > { %947 = vmatprep.subr.bf16.mxu0 %v2899_v61  ;;  %2665 = vmatprep.subr.bf16.mxu1 %v3105_v32 }
 0x13d   : > { %948 = vmatpush1.bf16.msra.mxu0 %v2901_v62  ;;  %2666 = vmatpush3.bf16.msra.mxu1 %v2902_v63 }
 0x13e   : > { %2677 = vmatprep.subr.bf16.mxu1 %v3105_v32  ;;  %2671 = vmatprep.subr.bf16.mxu0 %v3105_v32 }
 0x1b1   : > { %v726_v35 = vpop.xlane.xlu0 %725 }
 0x1b2   : > { %v730_v36 = vmul.f32 0.0078125, %v726_v35 }
 0x1b4   : > { %v3356_v37 = vsub.f32 %v3343_v28, %v730_v36 }
 0x1b5   : > { %v728_v38 = vpop.xlane.xlu0 %727 }
 0x1b6   : > { %v731_v39 = vmul.f32 0.0078125, %v728_v38  ;;  %v734_v40 = vmul.f32 %v3356_v37, %v3356_v37 }
 0x1b8   : > { %v3361_v41 = vsub.f32 %v3345_v29, %v731_v39  ;;  %736 = vadd.xlane.f32.xlu1 %v734_v40 }
 0x1ba   : > { %v735_v42 = vmul.f32 %v3361_v41, %v3361_v41 }
 0x1bc   : > { %738 = vadd.xlane.f32.xlu1 %v735_v42 }
 0x245   : > { %v737_v0 = vpop.xlane.xlu1 %736 }
 0x246   : > { %v740_v1 = vmul.f32 0.0078125, %v737_v0 }
 0x248   : > { %v742_v2 = vadd.f32 1e-05, %v740_v1 }
 0x249   : > { %v739_v3 = vpop.xlane.xlu1 %738 }
 0x24a   : > { %2951 = vrsqrt.f32 %v742_v2  ;;  %v741_v5 = vmul.f32 0.0078125, %v739_v3 }
 0x24c   : > { %v743_v6 = vadd.f32 1e-05, %v741_v5 }
 0x24e   : > { %2953 = vrsqrt.f32 %v743_v6 }
 0x254   : > { %v2952_v10 = vpop.eup %2951 }
 0x255   : > { %v746_v11 = vmul.f32 %v2952_v10, %v3356_v37 }
 0x257   : > { %v752_v16 = vmul.f32 %v751_v12, %v746_v11 }
 0x258   : > { %v2954_v14 = vpop.eup %2953 }
 0x259   : > { %v747_v15 = vmul.f32 %v2954_v14, %v3361_v41  ;;  %v758_v19 = vadd.f32 %v757_v17, %v752_v16 }
 0x25b   : > { %v753_v18 = vmul.f32 %v751_v12, %v747_v15 }
 0x25d   : > { %v759_v20 = vadd.f32 %v757_v17, %v753_v18 }
 0x25f   : > { %v760_v21 = vpack.c.bf16 %v759_v20, %v758_v19 }
 0x261   : > { %966 = vmatmul.mubr.bf16.vlgmr.msra.gmra.mrb[0].mxu0 %v760_v21  ;;  %2668 = vmatmul.mubr.bf16.vlgmr.msra.gmra.mrb[0].mxu1 %v760_v21 }
 0x262   : > { %2673 = vmatprep.mubr.msk.bf16.mxu0 %vm3107_vm0, %v3105_v32  ;;  %2679 = vmatprep.mubr.msk.bf16.mxu1 %vm3107_vm0, %v3105_v32 }
 0x334   : > { %v967_v27 = vpop.f32.mrb[0].mxu0  ;;  %v1010_v30 = vpop.f32.mrb[0].mxu1 }
 0x335   : > { %v969_v33 = vpop.f32.mrb[1].mxu0  ;;  %v2669_v34 = vpop.f32.mrb[1].mxu1  ;;  %v968_v37 = vadd.f32 %v967_v27, %v796_v25  ;;  %v1011_v38 = vadd.f32 %v1010_v30, %v804_v26 }
 0x336   : > { %v971_v35 = vpop.f32.mrb[2].mxu0  ;;  %v1013_v36 = vpop.f32.mrb[2].mxu1  ;;  %v970_v43 = vadd.f32 %v969_v33, %v800_v31 }
 0x337   : > { %v972_v39 = vadd.f32 %v971_v35, %v796_v25  ;;  %v1014_v40 = vadd.f32 %v1013_v36, %v804_v26  ;;  %v973_v41 = vpop.f32.mrb[3].mxu0  ;;  %v2670_v42 = vpop.f32.mrb[3].mxu1 }
 0x338   : > { %v974_v44 = vadd.f32 %v973_v41, %v800_v31 }
 0x339   : > { %v3419_v45 = vpack.c.bf16 %v972_v39, %v968_v37  ;;  %v3421_v46 = vpack.c.bf16 %v1014_v40, %v1011_v38  ;;  %v2905_v39 = vld [vmem:[%s3265_s12 + $0x10] sm:$0xff]   ;;  %v2906_v40 = vld [vmem:[%s3265_s12 + $0x18] sm:$0xff]  }
 0x33a   : > { %v3423_v47 = vpack.c.bf16 %v974_v44, %v970_v43 }
 0x33b   : > { %2678 = vmatpush3.bf16.msra.mxu1 %v3421_v46  ;;  %1159 = vrot.lane.b32.xlu1 %v3419_v45, %s3108_s21 }
 0x33c   : > { %1162 = vrot.lane.b32.xlu0 %v3423_v47, %s3108_s21  ;;  %v1044_v48 = vsel %vm1039_vm1, %v3423_v47, 0  ;;  %2689 = vmatprep.subr.bf16.mxu1 %v3105_v32 }
 0x33d   : > { %2672 = vmatpush3.bf16.xpose.msra.mxu0 %v1044_v48 }
 0x33e   : > { %2683 = vmatprep.subr.bf16.mxu0 %v3105_v32 }
 0x344   : > { %2674 = vmatmul.mubr.msk.bf16.vlgmr.msra.gmra.mrb[4].mxu0 %vm1039_vm1, %v3419_v45 }
 0x345   : > { %2685 = vmatprep.mubr.msk.bf16.mxu0 %vm3107_vm0, %v3105_v32 }
 0x3ad   : > { %v1160_v51 = vpop.permute.xlu1 %1159 }
 0x3ae   : > { %v1163_v49 = vpop.permute.xlu0 %1162 }
 0x3af   : > { %v1168_v50 = vsel %vm1039_vm1, %v1163_v49, 0 }
 0x3b0   : > { %2684 = vmatpush3.bf16.xpose.msra.mxu0 %v1168_v50 }
 0x3b1   : > { %2695 = vmatprep.subr.bf16.mxu0 %v3105_v32 }
 0x3b7   : > { %2686 = vmatmul.mubr.msk.bf16.vlgmr.msra.gmra.mrb[8].mxu0 %vm1039_vm1, %v1160_v51  ;;  %v2903_v51 = vld [vmem:[%s3265_s12] sm:$0xff]  }
 0x3b8   : > { %2699 = vmatprep.mubr.msk.bf16.mxu0 %vm3107_vm0, %v3105_v32  ;;  %2696 = vmatpush3.bf16.msra.mxu0 %v2905_v39  ;;  %v2907_v39 = vld [vmem:[%s3265_s12 + $0x20] sm:$0xff]  }
 0x3b9   : > { %2697 = vmatprep.subr.bf16.mxu0 %v3105_v32 }
 0x3bc   : > { %2698 = vmatpush3.bf16.msra.mxu0 %v2906_v40 }
 0x3bd   : > { %2711 = vmatprep.subr.bf16.mxu0 %v3105_v32 }
 0x417   : > { %v1080_v53 = vpop.f32.mrb[4].mxu0 }
 0x418   : > { %v1087_v54 = vsel %vm1019_vm2, %v1080_v53, -1e+30  ;;  %v2675_v55 = vpop.f32.mrb[5].mxu0 }
 0x419   : > { %v1083_v56 = vpop.f32.mrb[6].mxu0  ;;  %v1090_v57 = vsel %vm1089_vm3, %v1087_v54, -inf }
 0x41a   : > { %v1088_v59 = vsel %vm1019_vm2, %v1083_v56, -1e+30  ;;  %1091 = vmax.xlane.f32.xlu1 %v1090_v57  ;;  %v2676_v60 = vpop.f32.mrb[7].mxu0 }
 0x41b   : > { %v1093_v61 = vsel %vm1089_vm3, %v1088_v59, -inf }
 0x41c   : > { %1094 = vmax.xlane.f32.xlu0 %v1093_v61 }
 0x48a   : > { %v1204_v62 = vpop.f32.mrb[8].mxu0 }
 0x48b   : > { %v1211_v63 = vsel %vm1019_vm2, %v1204_v62, -1e+30  ;;  %v2687_v0 = vpop.f32.mrb[9].mxu0 }
 0x48c   : > { %v1207_v1 = vpop.f32.mrb[10].mxu0  ;;  %v1213_v2 = vsel %vm1089_vm3, %v1211_v63, -inf }
 0x48d   : > { %v1212_v3 = vsel %vm1019_vm2, %v1207_v1, -1e+30  ;;  %1214 = vmax.xlane.f32.xlu0 %v1213_v2  ;;  %v2688_v4 = vpop.f32.mrb[11].mxu0 }
 0x48e   : > { %v1216_v5 = vsel %vm1089_vm3, %v1212_v3, -inf }
 0x48f   : > { %1217 = vmax.xlane.f32.xlu1 %v1216_v5 }
 0x4a7   : > { %v1092_v6 = vpop.xlane.xlu1 %1091 }
 0x4a8   : > { %v1096_v8 = vsub.f32 %v1087_v54, %v1092_v6  ;;  %v2904_v54 = vld [vmem:[%s3265_s12 + $0x8] sm:$0xff]  }
 0x4a9   : > { %v1095_v10 = vpop.xlane.xlu0 %1094 }
 0x4aa   : > { %v1098_v11 = vmul.f32 1.442695, %v1096_v8  ;;  %v1097_v12 = vsub.f32 %v1088_v59, %v1095_v10 }
 0x4ac   : > { %2955 = vpow2.f32 %v1098_v11  ;;  %v1100_v13 = vmul.f32 1.442695, %v1097_v12 }
 0x4ae   : > { %2957 = vpow2.f32 %v1100_v13 }
 0x4b6   : > { %v2956_v14 = vpop.eup %2955 }
 0x4b7   : > { %v1102_v15 = vsel %vm1089_vm3, %v2956_v14, 0.0 }
 0x4b8   : > { %v2958_v16 = vpop.eup %2957  ;;  %1103 = vadd.xlane.f32.xlu0 %v1102_v15 }
 0x4b9   : > { %v1105_v17 = vsel %vm1089_vm3, %v2958_v16, 0.0 }
 0x4ba   : > { %1106 = vadd.xlane.f32.xlu1 %v1105_v17 }
 0x51a   : > { %v1215_v18 = vpop.xlane.xlu0 %1214 }
 0x51b   : > { %v1219_v19 = vsub.f32 %v1211_v63, %v1215_v18 }
 0x51c   : > { %v1218_v20 = vpop.xlane.xlu1 %1217 }
 0x51d   : > { %v1221_v21 = vmul.f32 1.442695, %v1219_v19  ;;  %v1220_v22 = vsub.f32 %v1212_v3, %v1218_v20 }
 0x51f   : > { %2959 = vpow2.f32 %v1221_v21  ;;  %v1223_v23 = vmul.f32 1.442695, %v1220_v22 }
 0x521   : > { %2961 = vpow2.f32 %v1223_v23 }
 0x529   : > { %v2960_v25 = vpop.eup %2959 }
 0x52a   : > { %v1225_v26 = vsel %vm1089_vm3, %v2960_v25, 0.0 }
 0x52b   : > { %v2962_v27 = vpop.eup %2961  ;;  %1226 = vadd.xlane.f32.xlu0 %v1225_v26 }
 0x52c   : > { %v1228_v30 = vsel %vm1089_vm3, %v2962_v27, 0.0 }
 0x52d   : > { %1229 = vadd.xlane.f32.xlu1 %v1228_v30 }
 0x53e   : > { %1399 = vrot.lane.b32.xlu1 %v3423_v47, %s3109_s25 }
 0x541   : > { %1237 = vrot.lane.b32.xlu0 %v3421_v46, %s3108_s21 }
 0x542   : > { %1397 = vrot.lane.b32.xlu1 %v3419_v45, %s3109_s25 }
 0x545   : > { %v1104_v31 = vpop.xlane.xlu0 %1103 }
 0x546   : > { %2963 = vrcp.f32 %v1104_v31 }
 0x547   : > { %v1107_v33 = vpop.xlane.xlu1 %1106 }
 0x548   : > { %2965 = vrcp.f32 %v1107_v33 }
 0x550   : > { %v2964_v34 = vpop.eup %2963 }
 0x551   : > { %v1110_v36 = vmul.f32 %v2964_v34, %v2956_v14 }
 0x552   : > { %v2966_v35 = vpop.eup %2965 }
 0x553   : > { %v1111_v37 = vmul.f32 %v2966_v35, %v2958_v16 }
 0x555   : > { %v1112_v38 = vpack.c.bf16 %v1111_v37, %v1110_v36 }
 0x557   : > { %2680 = vmatmul.mubr.msk.bf16.vlgmr.msra.gmra.mrb[4].mxu1 %vm1089_vm3, %v1112_v38 }
 0x558   : > { %2691 = vmatprep.mubr.msk.bf16.mxu1 %vm3107_vm0, %v3105_v32 }
 0x5b8   : > { %v1227_v41 = vpop.xlane.xlu0 %1226 }
 0x5b9   : > { %2967 = vrcp.f32 %v1227_v41 }
 0x5ba   : > { %v1230_v42 = vpop.xlane.xlu1 %1229 }
 0x5bb   : > { %2969 = vrcp.f32 %v1230_v42 }
 0x5bc   : > { %v1238_v43 = vpop.permute.xlu0 %1237 }
 0x5bd   : > { %2690 = vmatpush3.bf16.msra.mxu1 %v1238_v43 }
 0x5be   : > { %2703 = vmatprep.subr.bf16.mxu1 %v3105_v32  ;;  %v1400_v63 = vpop.permute.xlu1 %1399 }
 0x5bf   : > { %v1405_v3 = vsel %vm1039_vm1, %v1400_v63, 0 }
 0x5c2   : > { %v1398_v4 = vpop.permute.xlu1 %1397 }
 0x5c3   : > { %v2968_v44 = vpop.eup %2967 }
 0x5c4   : > { %v1233_v49 = vmul.f32 %v2968_v44, %v2960_v25 }
 0x5c5   : > { %v2970_v48 = vpop.eup %2969 }
 0x5c6   : > { %v1234_v50 = vmul.f32 %v2970_v48, %v2962_v27 }
 0x5c8   : > { %v1235_v53 = vpack.c.bf16 %v1234_v50, %v1233_v49 }
 0x5ca   : > { %2692 = vmatmul.mubr.msk.bf16.vlgmr.msra.gmra.mrb[8].mxu1 %vm1089_vm3, %v1235_v53  ;;  %v2908_v53 = vld [vmem:[%s3265_s12 + $0x28] sm:$0xff]  }
 0x5cb   : > { %2704 = vmatpush3.bf16.msra.mxu1 %v2903_v51  ;;  %2707 = vmatprep.mubr.msk.bf16.mxu1 %vm3107_vm0, %v3105_v32 }
 0x5cc   : > { %2705 = vmatprep.subr.bf16.mxu1 %v3105_v32 }
 0x5cf   : > { %2706 = vmatpush3.bf16.msra.mxu1 %v2904_v54 }
 0x5d0   : > { %2717 = vmatprep.subr.bf16.mxu1 %v3105_v32 }
 0x62a   : > { %v1150_v55 = vpop.f32.mrb[4].mxu1 }
 0x62b   : > { %v2681_v56 = vpop.f32.mrb[5].mxu1 }
 0x62c   : > { %v1153_v57 = vpop.f32.mrb[6].mxu1 }
 0x62d   : > { %v1157_v59 = vpack.c.bf16 %v1153_v57, %v1150_v55  ;;  %v2682_v60 = vpop.f32.mrb[7].mxu1 }
 0x62f   : > { %2708 = vmatmul.mubr.msk.bf16.vlgmr.msra.gmra.mrb[12].mxu1 %vm1039_vm1, %v1157_v59 }
 0x630   : > { %2719 = vmatprep.mubr.msk.bf16.mxu1 %vm3107_vm0, %v3105_v32 }
 0x69d   : > { %v1277_v61 = vpop.f32.mrb[8].mxu1 }
 0x69e   : > { %v2693_v62 = vpop.f32.mrb[9].mxu1 }
 0x69f   : > { %v1280_v0 = vpop.f32.mrb[10].mxu1 }
 0x6a0   : > { %v1284_v1 = vpack.c.bf16 %v1280_v0, %v1277_v61  ;;  %v2694_v2 = vpop.f32.mrb[11].mxu1 }
 0x6a2   : > { %2700 = vmatmul.mubr.msk.bf16.vlgmr.msra.gmra.mrb[12].mxu0 %vm1039_vm1, %v1284_v1 }
 0x6a3   : > { %2712 = vmatpush3.bf16.xpose.msra.mxu0 %v1405_v3  ;;  %2713 = vmatprep.mubr.msk.bf16.mxu0 %vm3107_vm0, %v3105_v32 }
 0x6a4   : > { %2723 = vmatprep.subr.bf16.mxu0 %v3105_v32 }
 0x6aa   : > { %2714 = vmatmul.mubr.msk.bf16.vlgmr.msra.gmra.mrb[16].mxu0 %vm1039_vm1, %v1398_v4 }
 0x6ab   : > { %2727 = vmatprep.mubr.msk.bf16.mxu0 %vm3107_vm0, %v3105_v32  ;;  %2724 = vmatpush3.bf16.msra.mxu0 %v2907_v39 }
 0x6ac   : > { %2725 = vmatprep.subr.bf16.mxu0 %v3105_v32 }
 0x6af   : > { %2726 = vmatpush3.bf16.msra.mxu0 %v2908_v53  ;;  %v2916_v53 = vld [vmem:[%s3275_s0 + $0x14] ss:$8 sps:$4 sm:$0xff]  }
 0x6b0   : > { %2737 = vmatprep.subr.bf16.mxu0 %v3105_v32 }
 0x702   : > { %v1390_v5 = vpop.f32.mrb[12].mxu1 }
 0x703   : > { %v2709_v6 = vpop.f32.mrb[13].mxu1 }
 0x704   : > { %v1393_v8 = vpop.f32.mrb[14].mxu1 }
 0x705   : > { %v2710_v10 = vpop.f32.mrb[15].mxu1 }
 0x775   : > { %v1334_v11 = vpop.f32.mrb[12].mxu0 }
 0x776   : > { %v3495_v12 = vadd.f32 %v1390_v5, %v1334_v11  ;;  %v2701_v13 = vpop.f32.mrb[13].mxu0 }
 0x777   : > { %v1337_v14 = vpop.f32.mrb[14].mxu0 }
 0x778   : > { %v3497_v15 = vadd.f32 %v1393_v8, %v1337_v14  ;;  %v2702_v16 = vpop.f32.mrb[15].mxu0 }
 0x77d   : > { %v1441_v17 = vpop.f32.mrb[16].mxu0 }
 0x77e   : > { %v1448_v18 = vsel %vm1019_vm2, %v1441_v17, -1e+30  ;;  %v2715_v19 = vpop.f32.mrb[17].mxu0  ;;  %v2909_v17 = vld [vmem:[%s3265_s12 + $0x30] sm:$0xff]  }
 0x77f   : > { %v1444_v20 = vpop.f32.mrb[18].mxu0  ;;  %v1450_v21 = vsel %vm1089_vm3, %v1448_v18, -inf }
 0x780   : > { %v1449_v22 = vsel %vm1019_vm2, %v1444_v20, -1e+30  ;;  %1451 = vmax.xlane.f32.xlu1 %v1450_v21  ;;  %v2716_v23 = vpop.f32.mrb[19].mxu0 }
 0x781   : > { %v1453_v25 = vsel %vm1089_vm3, %v1449_v22, -inf }
 0x782   : > { %1454 = vmax.xlane.f32.xlu0 %v1453_v25 }
 0x791   : > { %1473 = vrot.lane.b32.xlu1 %v3421_v46, %s3109_s25 }
 0x795   : > { %1579 = vrot.lane.b32.xlu1 %v3419_v45, %s3110_s14 }
 0x80d   : > { %v1452_v26 = vpop.xlane.xlu1 %1451 }
 0x80e   : > { %v1456_v27 = vsub.f32 %v1448_v18, %v1452_v26 }
 0x80f   : > { %v1455_v30 = vpop.xlane.xlu0 %1454 }
 0x810   : > { %v1458_v31 = vmul.f32 1.442695, %v1456_v27  ;;  %v1457_v33 = vsub.f32 %v1449_v22, %v1455_v30 }
 0x811   : > { %v1474_v34 = vpop.permute.xlu1 %1473 }
 0x812   : > { %2971 = vpow2.f32 %v1458_v31  ;;  %v1460_v35 = vmul.f32 1.442695, %v1457_v33  ;;  %2718 = vmatpush3.bf16.msra.mxu1 %v1474_v34 }
 0x813   : > { %2731 = vmatprep.subr.bf16.mxu1 %v3105_v32 }
 0x814   : > { %2973 = vpow2.f32 %v1460_v35 }
 0x81c   : > { %v2972_v36 = vpop.eup %2971 }
 0x81d   : > { %v1462_v37 = vsel %vm1089_vm3, %v2972_v36, 0.0 }
 0x81e   : > { %v2974_v38 = vpop.eup %2973  ;;  %1463 = vadd.xlane.f32.xlu0 %v1462_v37 }
 0x81f   : > { %v1465_v45 = vsel %vm1089_vm3, %v2974_v38, 0.0 }
 0x822   : > { %1466 = vadd.xlane.f32.xlu0 %v1465_v45 }
 0x838   : > { %1581 = vrot.lane.b32.xlu0 %v3423_v47, %s3110_s14  ;;  %v1580_v47 = vpop.permute.xlu1 %1579 }
 0x8ab   : > { %v1464_v40 = vpop.xlane.xlu0 %1463 }
 0x8ac   : > { %2975 = vrcp.f32 %v1464_v40 }
 0x8af   : > { %v1467_v41 = vpop.xlane.xlu0 %1466 }
 0x8b0   : > { %2977 = vrcp.f32 %v1467_v41 }
 0x8b3   : > { %v1582_v49 = vpop.permute.xlu0 %1581 }
 0x8b4   : > { %v1587_v51 = vsel %vm1039_vm1, %v1582_v49, 0 }
 0x8b6   : > { %v2976_v42 = vpop.eup %2975 }
 0x8b7   : > { %v1470_v44 = vmul.f32 %v2976_v42, %v2972_v36 }
 0x8ba   : > { %v2978_v43 = vpop.eup %2977 }
 0x8bb   : > { %v1471_v48 = vmul.f32 %v2978_v43, %v2974_v38  ;;  %v1765_v38 = vsub.s32 3, %v3397_v7 }
 0x8bd   : > { %v1472_v50 = vpack.c.bf16 %v1471_v48, %v1470_v44 }
 0x8bf   : > { %2720 = vmatmul.mubr.msk.bf16.vlgmr.msra.gmra.mrb[16].mxu1 %vm1089_vm3, %v1472_v50 }
 0x8c0   : > { %2732 = vmatpush3.bf16.xpose.msra.mxu1 %v1587_v51  ;;  %2733 = vmatprep.mubr.msk.bf16.mxu1 %vm3107_vm0, %v3105_v32  ;;  %v2911_v51 = vld [vmem:[%s3275_s0] ss:$8 sps:$4 sm:$0xff]  }
 0x8c1   : > { %2743 = vmatprep.subr.bf16.mxu1 %v3105_v32 }
 0x8c7   : > { %2734 = vmatmul.mubr.msk.bf16.vlgmr.msra.gmra.mrb[20].mxu1 %vm1039_vm1, %v1580_v47  ;;  %v2913_v47 = vld [vmem:[%s3275_s0 + $0x4] ss:$8 sps:$4 sm:$0xff]  }
 0x8c8   : > { %2747 = vmatprep.mubr.msk.bf16.mxu1 %vm3107_vm0, %v3105_v32  ;;  %2744 = vmatpush3.bf16.msra.mxu1 %v2909_v17 }
 0x8c9   : > { %2745 = vmatprep.subr.bf16.mxu1 %v3105_v32 }
 0x992   : > { %v1513_v54 = vpop.f32.mrb[16].mxu1 }
 0x993   : > { %v2721_v55 = vpop.f32.mrb[17].mxu1 }
 0x994   : > { %v1516_v56 = vpop.f32.mrb[18].mxu1 }
 0x995   : > { %v1520_v57 = vpack.c.bf16 %v1516_v56, %v1513_v54  ;;  %v2722_v59 = vpop.f32.mrb[19].mxu1 }
 0x997   : > { %2728 = vmatmul.mubr.msk.bf16.vlgmr.msra.gmra.mrb[20].mxu0 %vm1039_vm1, %v1520_v57 }
 0x998   : > { %2739 = vmatprep.mubr.msk.bf16.mxu0 %vm3107_vm0, %v3105_v32 }
 0x99a   : > { %v1623_v60 = vpop.f32.mrb[20].mxu1 }
 0x99b   : > { %v1630_v61 = vsel %vm1019_vm2, %v1623_v60, -1e+30  ;;  %v2735_v62 = vpop.f32.mrb[21].mxu1 }
 0x99c   : > { %v1626_v63 = vpop.f32.mrb[22].mxu1  ;;  %v1632_v0 = vsel %vm1089_vm3, %v1630_v61, -inf  ;;  %v2919_v62 = vld [vmem:[%s3275_s0 + $0x24] ss:$8 sps:$4 sm:$0xff]  }
 0x99d   : > { %v1631_v1 = vsel %vm1019_vm2, %v1626_v63, -1e+30  ;;  %1633 = vmax.xlane.f32.xlu1 %v1632_v0  ;;  %v2736_v2 = vpop.f32.mrb[23].mxu1  ;;  %v2917_v63 = vld [vmem:[%s3275_s0 + $0x20] ss:$8 sps:$4 sm:$0xff]  }
 0x99e   : > { %v1635_v3 = vsel %vm1089_vm3, %v1631_v1, -inf  ;;  %v2922_v0 = vld [vmem:[%s3275_s0 + $0x34] ss:$8 sps:$4 sm:$0xff]   ;;  %v2925_v2 = vld [vmem:[%s3275_s0 + $0x44] ss:$8 sps:$4 sm:$0xff]  }
 0x99f   : > { %1636 = vmax.xlane.f32.xlu0 %v1635_v3  ;;  %v2923_v3 = vld [vmem:[%s3275_s0 + $0x40] ss:$8 sps:$4 sm:$0xff]  }
 0xa2a   : > { %v1634_v4 = vpop.xlane.xlu1 %1633 }
 0xa2b   : > { %v1638_v5 = vsub.f32 %v1630_v61, %v1634_v4  ;;  %v2928_v4 = vld [vmem:[%s3275_s0 + $0x54] ss:$8 sps:$4 sm:$0xff]  }
 0xa2c   : > { %v1637_v6 = vpop.xlane.xlu0 %1636 }
 0xa2d   : > { %v1640_v8 = vmul.f32 1.442695, %v1638_v5  ;;  %v1639_v10 = vsub.f32 %v1631_v1, %v1637_v6  ;;  %v2920_v1 = vld [vmem:[%s3275_s0 + $0x30] ss:$8 sps:$4 sm:$0xff]   ;;  %v2931_v6 = vld [vmem:[%s3275_s0 + $0x64] ss:$8 sps:$4 sm:$0xff]  }
 0xa2e   : > { %v2926_v5 = vld [vmem:[%s3275_s0 + $0x50] ss:$8 sps:$4 sm:$0xff]  }
 0xa2f   : > { %2979 = vpow2.f32 %v1640_v8  ;;  %v1642_v11 = vmul.f32 1.442695, %v1639_v10  ;;  %v2929_v8 = vld [vmem:[%s3275_s0 + $0x60] ss:$8 sps:$4 sm:$0xff]   ;;  %v2934_v10 = vld [vmem:[%s3275_s0 + $0x74] ss:$8 sps:$4 sm:$0xff]  }
 0xa31   : > { %2981 = vpow2.f32 %v1642_v11  ;;  %v2932_v11 = vld [vmem:[%s3275_s0 + $0x70] ss:$8 sps:$4 sm:$0xff]  }
 0xa39   : > { %v2980_v13 = vpop.eup %2979 }
 0xa3a   : > { %v1644_v14 = vsel %vm1089_vm3, %v2980_v13, 0.0 }
 0xa3b   : > { %v2982_v16 = vpop.eup %2981  ;;  %1645 = vadd.xlane.f32.xlu0 %v1644_v14 }
 0xa3c   : > { %v1647_v52 = vsel %vm1089_vm3, %v2982_v16, 0.0 }
 0xa3d   : > { %1648 = vadd.xlane.f32.xlu1 %v1647_v52 }
 0xa51   : > { %1655 = vrot.lane.b32.xlu0 %v3421_v46, %s3110_s14 }
 0xa6a   : > { %v1570_v18 = vpop.f32.mrb[20].mxu0 }
 0xa6b   : > { %v1577_v19 = vadd.f32 %v1570_v18, %v3495_v12  ;;  %v2729_v20 = vpop.f32.mrb[21].mxu0  ;;  %v2910_v12 = vld [vmem:[%s3265_s12 + $0x38] sm:$0xff]  }
 0xa6c   : > { %v1573_v21 = vpop.f32.mrb[22].mxu0  ;;  %2746 = vmatpush3.bf16.msra.mxu1 %v2910_v12  ;;  %v2935_v12 = vld [vmem:[%s3280_s19 + $0x40] sm:$0xff]  }
 0xa6d   : > { %v1578_v22 = vadd.f32 %v1573_v21, %v3497_v15  ;;  %v2730_v23 = vpop.f32.mrb[23].mxu0  ;;  %2620 = vmatprep.subr.bf16.mxu1 %v2935_v12 }
 0xa6e   : > { %v1799_v23 = vsub.s32 5, %v3397_v7 }
 0xac8   : > { %v1646_v25 = vpop.xlane.xlu0 %1645 }
 0xac9   : > { %2983 = vrcp.f32 %v1646_v25 }
 0xaca   : > { %v1649_v26 = vpop.xlane.xlu1 %1648 }
 0xacb   : > { %2985 = vrcp.f32 %v1649_v26 }
 0xacc   : > { %v1656_v27 = vpop.permute.xlu0 %1655 }
 0xacd   : > { %2738 = vmatpush3.bf16.msra.mxu0 %v1656_v27 }
 0xace   : > { %1908 = vmatprep.subr.bf16.mxu0 %v2913_v47 }
 0xad3   : > { %v2984_v46 = vpop.eup %2983 }
 0xad4   : > { %v1652_v31 = vmul.f32 %v2984_v46, %v2980_v13  ;;  %v1800_v46 = vrot.slane %v3401_v9, %v1799_v23 }
 0xad5   : > { %v2986_v30 = vpop.eup %2985 }
 0xad6   : > { %v1653_v33 = vmul.f32 %v2986_v30, %v2982_v16 }
 0xad8   : > { %v1654_v32 = vpack.c.bf16 %v1653_v33, %v1652_v31 }
 0xada   : > { %2740 = vmatmul.mubr.msk.bf16.vlgmr.msra.gmra.mrb[24].mxu0 %vm1089_vm3, %v1654_v32 }
 0xadb   : > { %1940 = vmatprep.mubr.bf16.mxu0 %v3106_v58  ;;  %v1766_v58 = vrot.slane %v3401_v9, %v1765_v38  ;;  %1909 = vmatpush1.bf16.msra.mxu0 %v2911_v51  ;;  %v2941_v38 = vld [vmem:[%s3280_s19 + $0x58] sm:$0xff]   ;;  %v1822_v51 = vsub.s32 6, %v3397_v7 }
 0xadc   : > { %1910 = vmatprep.subr.bf16.mxu0 %v2916_v53 }
 0xadd   : > { %v1823_v47 = vrot.slane %v3401_v9, %v1822_v51  ;;  %v1827_v53 = vrot.slane %v3415_v24, %v1822_v51 }
 0xbad   : > { %v1695_v34 = vpop.f32.mrb[24].mxu0 }
 0xbae   : > { %v2741_v15 = vpop.f32.mrb[25].mxu0 }
 0xbaf   : > { %v1698_v35 = vpop.f32.mrb[26].mxu0  ;;  %v2937_v15 = vld [vmem:[%s3280_s19 + $0x48] sm:$0xff]  }
 0xbb0   : > { %v1702_v36 = vpack.c.bf16 %v1698_v35, %v1695_v34  ;;  %v2742_v37 = vpop.f32.mrb[27].mxu0  ;;  %v2936_v34 = vld [vmem:[%s3280_s19] sm:$0xff]   ;;  %v2938_v35 = vld [vmem:[%s3280_s19 + $0x8] sm:$0xff]  }
 0xbb1   : > { %v2940_v37 = vld [vmem:[%s3280_s19 + $0x10] sm:$0xff]  }
 0xbb2   : > { %2748 = vmatmul.mubr.msk.bf16.vlgmr.msra.gmra.mrb[24].mxu1 %vm1039_vm1, %v1702_v36  ;;  %v2939_v36 = vld [vmem:[%s3280_s19 + $0x50] sm:$0xff]  }
 0xbb3   : > { %2621 = vmatpush3.bf16.msra.mxu1 %v2936_v34 }
 0xbb4   : > { %2622 = vmatprep.subr.bf16.mxu1 %v2937_v15 }
 0xbb7   : > { %2623 = vmatpush3.bf16.msra.mxu1 %v2938_v35 }
 0xbb8   : > { %2624 = vmatprep.subr.bf16.mxu1 %v2939_v36 }
 0xbbb   : > { %2625 = vmatpush3.bf16.msra.mxu1 %v2940_v37  ;;  %v2023_v37 = vsub.s32 7, %v3397_v7 }
 0xbbc   : > { %2626 = vmatprep.subr.bf16.mxu1 %v2941_v38 }
 0xc85   : > { %v1752_v45 = vpop.f32.mrb[24].mxu1 }
 0xc86   : > { %v1759_v39 = vadd.f32 %v1752_v45, %v1577_v19  ;;  %v2749_v40 = vpop.f32.mrb[25].mxu1  ;;  %v1793_v19 = vsub.s32 4, %v3397_v7  ;;  %v2942_v45 = vld [vmem:[%s3280_s19 + $0x18] sm:$0xff]  }
 0xc87   : > { %v1755_v41 = vpop.f32.mrb[26].mxu1  ;;  %2627 = vmatpush3.bf16.msra.mxu1 %v2942_v45  ;;  %v2944_v40 = vld [vmem:[%s3280_s19 + $0x20] sm:$0xff]   ;;  %v2024_v45 = vrot.slane %v3401_v9, %v2023_v37 }
 0xc88   : > { %v1761_v42 = vadd.f32 %v1759_v39, %v3343_v28  ;;  %v1760_v43 = vadd.f32 %v1755_v41, %v1578_v22  ;;  %v2750_v44 = vpop.f32.mrb[27].mxu1  ;;  %v2914_v28 = vld [vmem:[%s3275_s0 + $0x10] ss:$8 sps:$4 sm:$0xff]   ;;  %v1794_v22 = vrot.slane %v3401_v9, %v1793_v19  ;;  %v2943_v39 = vld [vmem:[%s3280_s19 + $0x60] sm:$0xff]   ;;  %v2946_v41 = vld [vmem:[%s3280_s19 + $0x28] sm:$0xff]  }
 0xc89   : > { %1911 = vmatpush1.bf16.msra.mxu0 %v2914_v28  ;;  %2628 = vmatprep.subr.bf16.mxu1 %v2943_v39  ;;  %v2949_v44 = vld [vmem:[%s3280_s19 + $0x78] sm:$0xff]   ;;  %v2999_v9 = vld [vmem:[%s3701_s10] sm:$0xff] (!%p2545_p1)  }
 0xc8a   : > { %v1762_v48 = vadd.f32 %v1760_v43, %v3345_v29  ;;  %v3551_v49 = vadd.f32 %v1766_v58, %v1761_v42  ;;  %1912 = vmatprep.subr.bf16.mxu0 %v2919_v62  ;;  %v2947_v42 = vld [vmem:[%s3280_s19 + $0x70] sm:$0xff]  }
 0xc8b   : > { %2629 = vmatpush3.bf16.msra.mxu1 %v2944_v40  ;;  %v2948_v43 = vld [vmem:[%s3280_s19 + $0x30] sm:$0xff]  }
 0xc8c   : > { %1769 = vadd.xlane.f32.xlu1 %v3551_v49  ;;  %v3554_v50 = vadd.f32 %v1766_v58, %v1762_v48  ;;  %v2945_v58 = vld [vmem:[%s3280_s19 + $0x68] sm:$0xff]   ;;  %v2950_v48 = vld [vmem:[%s3280_s19 + $0x38] sm:$0xff]  }
 0xc8d   : > { %1913 = vmatpush1.bf16.msra.mxu0 %v2917_v63  ;;  %2630 = vmatprep.subr.bf16.mxu1 %v2945_v58 }
 0xc8e   : > { %1914 = vmatprep.subr.bf16.mxu0 %v2922_v0 }
 0xc8f   : > { %2631 = vmatpush3.bf16.msra.mxu1 %v2946_v41 }
 0xc90   : > { %1771 = vadd.xlane.f32.xlu1 %v3554_v50  ;;  %2632 = vmatprep.subr.bf16.mxu1 %v2947_v42 }
 0xc91   : > { %1915 = vmatpush1.bf16.msra.mxu0 %v2920_v1 }
 0xc92   : > { %1916 = vmatprep.subr.bf16.mxu0 %v2925_v2 }
 0xc93   : > { %2633 = vmatpush3.bf16.msra.mxu1 %v2948_v43 }
 0xc94   : > { %2634 = vmatprep.subr.bf16.mxu1 %v2949_v44 }
 0xc95   : > { %1917 = vmatpush1.bf16.msra.mxu0 %v2923_v3 }
 0xc96   : > { %1918 = vmatprep.subr.bf16.mxu0 %v2928_v4 }
 0xc97   : > { %2635 = vmatpush3.bf16.msra.mxu1 %v2950_v48 }
 0xc99   : > { %1919 = vmatpush1.bf16.msra.mxu0 %v2926_v5 }
 0xc9a   : > { %1920 = vmatprep.subr.bf16.mxu0 %v2931_v6 }
 0xc9d   : > { %1921 = vmatpush1.bf16.msra.mxu0 %v2929_v8 }
 0xc9e   : > { %1922 = vmatprep.subr.bf16.mxu0 %v2934_v10 }
 0xca1   : > { %1923 = vmatpush1.bf16.msra.mxu0 %v2932_v11 }
 0xd19   : > { %v1770_v29 = vpop.xlane.xlu1 %1769 }
 0xd1a   : > { %v1773_v54 = vmul.f32 0.0078125, %v1770_v29 }
 0xd1c   : > { %v1775_v55 = vsub.f32 %v3551_v49, %v1773_v54 }
 0xd1d   : > { %v1772_v56 = vpop.xlane.xlu1 %1771 }
 0xd1e   : > { %v1774_v57 = vmul.f32 0.0078125, %v1772_v56  ;;  %v1777_v59 = vmul.f32 %v1775_v55, %v1775_v55 }
 0xd20   : > { %v1776_v60 = vsub.f32 %v3554_v50, %v1774_v57  ;;  %1779 = vadd.xlane.f32.xlu1 %v1777_v59 }
 0xd22   : > { %v1778_v61 = vmul.f32 %v1776_v60, %v1776_v60 }
 0xd24   : > { %1781 = vadd.xlane.f32.xlu1 %v1778_v61 }
 0xdad   : > { %v1780_v13 = vpop.xlane.xlu1 %1779 }
 0xdae   : > { %v1783_v14 = vmul.f32 0.0078125, %v1780_v13 }
 0xdb0   : > { %v1785_v16 = vadd.f32 1e-05, %v1783_v14 }
 0xdb1   : > { %v1782_v52 = vpop.xlane.xlu1 %1781 }
 0xdb2   : > { %2987 = vrsqrt.f32 %v1785_v16  ;;  %v1784_v17 = vmul.f32 0.0078125, %v1782_v52 }
 0xdb4   : > { %v1786_v18 = vadd.f32 1e-05, %v1784_v17 }
 0xdb6   : > { %2989 = vrsqrt.f32 %v1786_v18 }
 0xdbc   : > { %v2988_v20 = vpop.eup %2987 }
 0xdbd   : > { %v1789_v21 = vmul.f32 %v2988_v20, %v1775_v55 }
 0xdbf   : > { %v1795_v27 = vmul.f32 %v1794_v22, %v1789_v21 }
 0xdc0   : > { %v2990_v25 = vpop.eup %2989 }
 0xdc1   : > { %v1790_v26 = vmul.f32 %v2990_v25, %v1776_v60  ;;  %v1801_v31 = vadd.f32 %v1800_v46, %v1795_v27 }
 0xdc3   : > { %v1796_v30 = vmul.f32 %v1794_v22, %v1790_v26 }
 0xdc5   : > { %v1802_v33 = vadd.f32 %v1800_v46, %v1796_v30 }
 0xdc7   : > { %v1803_v32 = vpack.c.bf16 %v1802_v33, %v1801_v31 }
 0xdc9   : > { %1941 = vmatmul.mubr.bf16.vlgmr.msra.gmra.mrb[28].mxu0 %v1803_v32 }
 0xe9c   : > { %v1942_v28 = vpop.f32.mrb[28].mxu0 }
 0xe9d   : > { %v1943_v29 = vadd.f32 %v1942_v28, %v1823_v47  ;;  %v1944_v54 = vpop.f32.mrb[29].mxu0 }
 0xe9e   : > { %v1945_v55 = vadd.f32 %v1944_v54, %v1827_v53  ;;  %v1946_v56 = vpop.f32.mrb[30].mxu0 }
 0xe9f   : > { %v1951_v57 = vmul.f32 %v1943_v29, %v1943_v29  ;;  %v1947_v59 = vadd.f32 %v1946_v56, %v1823_v47  ;;  %v1948_v60 = vpop.f32.mrb[31].mxu0  ;;  %v3111_v47 = vmov (!%p2545_p1), 0.0   ;;  %v3002_v56 = vld [vmem:[%s3701_s10 + $0x18] sm:$0xff] (!%p2545_p1)  }
 0xea0   : > { %v1952_v61 = vmul.f32 %v1945_v55, %v1945_v55  ;;  %v1949_v62 = vadd.f32 %v1948_v60, %v1827_v53  ;;  %2751 = vmatprep.subr.bf16.mxu0 (!%p2545_p1), %v3111_v47  ;;  %2767 = vmatprep.mubr.msk.bf16.mxu0 (!%p2545_p1), %vm3112_vm5, %v3111_v47  ;;  %v3005_v60 = vld [vmem:[%s3701_s10 + $0x30] sm:$0xff] (!%p2545_p1)  }
 0xea1   : > { %v1955_v63 = vmul.f32 %v1951_v57, %v1943_v29  ;;  %v1953_v0 = vmul.f32 %v1947_v59, %v1947_v59  ;;  %2752 = vmatpush3.bf16.msra.mxu0 (!%p2545_p1), %v2999_v9  ;;  %v3003_v57 = vld [vmem:[%s3701_s10 + $0x20] sm:$0xff] (!%p2545_p1)  }
 0xea2   : > { %v1956_v1 = vmul.f32 %v1952_v61, %v1945_v55  ;;  %v1954_v2 = vmul.f32 %v1949_v62, %v1949_v62  ;;  %2753 = vmatprep.subr.bf16.mxu0 (!%p2545_p1), %v3111_v47  ;;  %v3006_v61 = vld [vmem:[%s3701_s10 + $0x38] sm:$0xff] (!%p2545_p1)  }
 0xea3   : > { %v1959_v3 = vmul.f32 0.044715, %v1955_v63  ;;  %v1957_v4 = vmul.f32 %v1953_v0, %v1947_v59 }
 0xea4   : > { %v1960_v5 = vmul.f32 0.044715, %v1956_v1  ;;  %v1958_v6 = vmul.f32 %v1954_v2, %v1949_v62  ;;  %v2170_v2 = vld [vmem:[%s3699_s8] sm:$0x1] (!%p2545_p1) }
 0xea5   : > { %v1963_v8 = vadd.f32 %v1959_v3, %v1943_v29  ;;  %v1961_v24 = vmul.f32 0.044715, %v1957_v4  ;;  %v2171_v4 = vld [vmem:[%s3700_s9] sm:$0x1] (!%p2545_p1) }
 0xea6   : > { %v1964_v10 = vadd.f32 %v1960_v5, %v1945_v55  ;;  %v1962_v11 = vmul.f32 0.044715, %v1958_v6 }
 0xea7   : > { %v1967_v13 = vmul.f32 0.7978846, %v1963_v8  ;;  %v1965_v14 = vadd.f32 %v1961_v24, %v1947_v59  ;;  %v2205_v24 = vld [vmem:[%s3734_s27] sm:$0x1] (!%p2545_p1) }
 0xea8   : > { %v1968_v16 = vmul.f32 0.7978846, %v1964_v10  ;;  %v1966_v52 = vadd.f32 %v1962_v11, %v1949_v62 }
 0xea9   : > { %2991 = vtanh.f32 %v1967_v13  ;;  %v1969_v17 = vmul.f32 0.7978846, %v1965_v14 }
 0xeaa   : > { %2993 = vtanh.f32 %v1968_v16  ;;  %v1970_v18 = vmul.f32 0.7978846, %v1966_v52 }
 0xeab   : > { %2995 = vtanh.f32 %v1969_v17 }
 0xeac   : > { %2997 = vtanh.f32 %v1970_v18 }
 0xeb3   : > { %v2992_v19 = vpop.eup %2991 }
 0xeb4   : > { %v2994_v20 = vpop.eup %2993  ;;  %v1975_v21 = vadd.f32 1.0, %v2992_v19 }
 0xeb5   : > { %v2996_v22 = vpop.eup %2995  ;;  %v1976_v23 = vadd.f32 1.0, %v2994_v20 }
 0xeb6   : > { %v2998_v25 = vpop.eup %2997  ;;  %v1979_v26 = vmul.f32 0.5, %v1975_v21  ;;  %v1977_v27 = vadd.f32 1.0, %v2996_v22 }
 0xeb7   : > { %v1978_v46 = vadd.f32 1.0, %v2998_v25  ;;  %v1980_v30 = vmul.f32 0.5, %v1976_v23 }
 0xeb8   : > { %v1981_v31 = vmul.f32 0.5, %v1977_v27  ;;  %v1983_v32 = vmul.f32 %v1979_v26, %v1943_v29 }
 0xeb9   : > { %v1982_v33 = vmul.f32 0.5, %v1978_v46  ;;  %v1984_v34 = vmul.f32 %v1980_v30, %v1945_v55  ;;  %v3001_v55 = vld [vmem:[%s3701_s10 + $0x10] sm:$0xff] (!%p2545_p1)  }
 0xeba   : > { %v1985_v12 = vmul.f32 %v1981_v31, %v1947_v59  ;;  %v3004_v59 = vld [vmem:[%s3701_s10 + $0x28] sm:$0xff] (!%p2545_p1)  }
 0xebb   : > { %v1986_v15 = vmul.f32 %v1982_v33, %v1949_v62 }
 0xebc   : > { %v1987_v35 = vpack.c.bf16 %v1985_v12, %v1983_v32 }
 0xebd   : > { %v1988_v36 = vpack.c.bf16 %v1986_v15, %v1984_v34 }
 0xebf   : > { %2153 = vmatprep.mubr.bf16.mxu1 %v1988_v36 }
 0xec0   : > { %2154 = vmatmul.mubr.bf16.vlgmr.msra.gmra.mrb[28].mxu1 %v1987_v35 }
 0xf93   : > { %v2636_v38 = vpop.f32.mrb[28].mxu1 }
 0xf94   : > { %v2637_v39 = vpop.f32.mrb[29].mxu1 }
 0xf95   : > { %v2638_v40 = vadd.f32 %v2637_v39, %v2636_v38  ;;  %v2639_v58 = vpop.f32.mrb[30].mxu1 }
 0xf96   : > { %v2640_v41 = vpop.f32.mrb[31].mxu1 }
 0xf97   : > { %v2156_v42 = vadd.f32 %v2638_v40, %v2024_v45  ;;  %v2641_v43 = vadd.f32 %v2640_v41, %v2639_v58  ;;  %2169 = sbr.rel (%p2545_p1) target bundleno = 4525 (0x11ad), region = 76 }
 0xf99   : > { %v2162_v44 = vadd.f32 %v2156_v42, %v3551_v49  ;;  %v2159_v48 = vadd.f32 %v2641_v43, %v2024_v45  ;;  %v3000_v49 = vld [vmem:[%s3701_s10 + $0x8] sm:$0xff] (!%p2545_p1)  }
 0xf9a   : > { %2754 = vmatpush3.bf16.msra.mxu0 (!%p2545_p1), %v3000_v49 }
 0xf9b   : > { %2164 = vst [vmem:[#allocation2] sm:$0xff] %v2162_v44  ;;  %v2163_v51 = vadd.f32 %v2159_v48, %v3554_v50  ;;  %v2173_v7 = vsel (!%p2545_p1), %vm2172_vm4, %v2162_v44, 0.0  ;;  %2755 = vmatprep.subr.bf16.mxu0 (!%p2545_p1), %v3111_v47 }
 0xf9c   : > { %2174 = vadd.xlane.f32.xlu0 (!%p2545_p1), %v2173_v7 }
 0xf9d   : > { %2165 = vst [vmem:[#allocation2 + $0x8] sm:$0xff] %v2163_v51 }
 0xf9e   : > { %2756 = vmatpush3.bf16.msra.mxu0 %v3001_v55 }
 0xf9f   : > { %2757 = vmatprep.subr.bf16.mxu0 %v3111_v47 }
 0xfa2   : > { %2758 = vmatpush3.bf16.msra.mxu0 %v3002_v56 }
 0xfa3   : > { %2759 = vmatprep.subr.bf16.mxu0 %v3111_v47 }
 0xfa6   : > { %2760 = vmatpush3.bf16.msra.mxu0 %v3003_v57 }
 0xfa7   : > { %2761 = vmatprep.subr.bf16.mxu0 %v3111_v47 }
 0xfaa   : > { %2762 = vmatpush3.bf16.msra.mxu0 %v3004_v59 }
 0xfab   : > { %2763 = vmatprep.subr.bf16.mxu0 %v3111_v47 }
 0xfae   : > { %2764 = vmatpush3.bf16.msra.mxu0 %v3005_v60 }
 0xfaf   : > { %2765 = vmatprep.subr.bf16.mxu0 %v3111_v47 }
 0xfb2   : > { %2766 = vmatpush3.bf16.msra.mxu0 %v3006_v61 }
0x1029   : > { %v2175_v50 = vpop.xlane.xlu0 %2174 }
0x102a   : > { %v2176_v53 = vmul.f32 0.0078125, %v2175_v50 }
0x102c   : > { %v2177_v28 = vsub.f32 %v2162_v44, %v2176_v53 }
0x102e   : > { %v2178_v29 = vmul.f32 %v2177_v28, %v2177_v28 }
0x1030   : > { %v2179_v54 = vsel %vm2172_vm4, %v2178_v29, 0.0 }
0x1031   : > { %2180 = vadd.xlane.f32.xlu0 %v2179_v54 }
0x10be   : > { %v2181_v62 = vpop.xlane.xlu0 %2180 }
0x10bf   : > { %v2182_v63 = vmul.f32 0.0078125, %v2181_v62 }
0x10c1   : > { %v2183_v0 = vadd.f32 1e-05, %v2182_v63 }
0x10c3   : > { %3007 = vrsqrt.f32 %v2183_v0 }
0x10cd   : > { %v3008_v1 = vpop.eup %3007 }
0x10ce   : > { %v2185_v3 = vmul.f32 %v3008_v1, %v2177_v28 }
0x10d0   : > { %v2186_v5 = vmul.f32 %v2185_v3, %v2170_v2 }
0x10d2   : > { %v2187_v6 = vadd.f32 %v2186_v5, %v2171_v4 }
0x10d4   : > { %v2188_v8 = vpack.c.bf16 %v2187_v6, %v2187_v6 }
0x10d6   : > { %2768 = vmatmul.mubr.bf16.vlgmr.msra.gmra.mrb[0].mxu0 %v2188_v8 }
0x11a9   : > { %v2288_v10 = vpop.f32.mrb[0].mxu0 }
0x11aa   : > { %v2289_v11 = vadd.f32 %v2288_v10, %v2205_v24  ;;  %v2769_v13 = vpop.f32.mrb[1].mxu0 }
0x11ab   : > { %v2291_v14 = vpop.f32.mrb[2].mxu0 }
0x11ac   : > { %2294 = vst [vmem:[%s3284_s28] sm:$0x1] %v2289_v11  ;;  %v2770_v16 = vpop.f32.mrb[3].mxu0 }
0x11ad PF: > { %s3735_s24 = sld [smem:[#allocation8_spill]]  ;;  %s2308_s26 = sshll.u32 %s3284_s28, 4  ;;  %s2309_s26 = int_to_ptr.vmem [resolvable:$true] %s2308_s26 }
0x11ae   : > { %s3737_s29 = sld [smem:[#allocation19_spill]]  ;;  %s3738_s13 = sand.u32 1, %s3079_s22  }
0x11af   : > { %s2296_s16 = scalar_lea.sflag [#allocation4], %s3738_s13  ;;  %s3009_s23 = scalar_lea.vmem %s2309_s26, 16 }
0x11b0   : > { %p3010_p2 = scmp.ne.s32.totalorder %s2309_s26, %s3009_s23  ;;  %s3113_s17 = smov [#allocation3]  }
0x11b1   : > { %s3013_s21 = sshll.u32 %s3113_s17, 4  ;;  %s3014_s21 = int_to_ptr.vmem [resolvable:$false] %s3013_s21 }
0x11b2   : > { %p3011_p4 = pnand %p3010_p2, %p3228_p3  ;;  %s3015_s25 = scalar_lea.vmem %s3014_s21, 32 }
0x11b3   : > { %s2554_s20 = sshll.u32 %s3735_s24, 4  ;;  %p3016_p6 = scmp.lt.s32.totalorder %s2309_s26, %s3014_s21 }
0x11b4   : > { %s3641_s11 = scalar_lea.hbm %s3737_s29, %s2554_s20  ;;  %p3012_p5 = pneg %p3011_p4 }
0x11b5   : > { %p3017_p7 = scmp.lt.s32.totalorder %s3015_s25, %s3009_s23 }
0x11b7   : > { %p3018_p8 = por %p3017_p7, %p3016_p6 }
0x11b9   : > { %p3019_p10 = pnand %p3018_p8, %p3012_p5 }
0x11bb   : > { %3022 = shalt.err (!%p3019_p10)
}
0x11bc   : > { %s3023_s28 = scalar_lea.hbm %s3641_s11, 16  ;;  %s3027_s12 = scalar_lea.hbm %s3737_s29, 32 }
0x11bd   : > { %p3024_p11 = scmp.ne.s32.totalorder %s3641_s11, %s3023_s28  ;;  %p3028_p0 = scmp.lt.u32.totalorder %s3641_s11, %s3737_s29 }
0x11be   : > { %p3029_p1 = scmp.lt.u32.totalorder %s3027_s12, %s3023_s28  ;;  %p3031_p4 = scmp.lt.u32.totalorder %s3023_s28, %s3641_s11 }
0x11bf   : > { %p3025_p12 = pnand %p3024_p11, %p3228_p3 }
0x11c0   : > { %p3030_p2 = por %p3029_p1, %p3028_p0 }
0x11c1   : > { %p3026_p13 = pneg %p3025_p12 }
0x11c2   : > { %p3032_p5 = por %p3031_p4, %p3030_p2 }
0x11c4   : > { %p3033_p6 = pnand %p3032_p5, %p3026_p13 }
0x11c6   : > { %3036 = shalt.err (!%p3033_p6)
}
0x11c7   : > { %2773 = dma.vmem_to_hbm [thread:$0]  (%p3228_p3), %s2309_s26, 16, %s3641_s11, %s2296_s16  }
0x11c8 PF: > { %s3739_s24 = sld [smem:[#allocation11_spill]]  ;;  %s3740_s20 = sld [smem:[#allocation6_spill]] }
0x11ce   : > { %p2779_p7 = scmp.ge.s32.totalorder %s3739_s24, 2  ;;  %s2320_s18 = sand.u32 1, %s3740_s20  }
0x11cf   : > { %s2321_s13 = scalar_lea.sflag [#allocation4], %s2320_s18 }
0x11d0   : > { %p2776_p8 = pnand %p2779_p7, %p3238_p9 }
0x11d2   : > { %3070 = dma.done.wait (!%p2776_p8), %s2321_s13, 16  }
0x11d3   : > { %3072 = vsyncadd (!%p2776_p8), %s2321_s13, 4294967280  ;;  %s25_s28 = sadd.s32 1, %s3739_s24   ;;  %s3742_s23 = sld [smem:[#allocation7_spill]] }
0x11d4   : > { %p22_p10 = scmp.ge.s32.totalorder %s25_s28, 6   ;;  %s3743_s17 = sld [smem:[#allocation16_spill]] }
0x11d5   : > { %s3744_s24 = sld [smem:[#allocation9_spill]]  ;;  %s3745_s25 = sld [smem:[#allocation10_spill]] }
0x11d6   : > { %s3746_s26 = sld [smem:[#allocation12_spill]]  ;;  %s3747_s27 = sld [smem:[#allocation14_spill]] }
0x11d7   : > { %s3748_s21 = smov %s3079_s22  ;;  %24 = sbr.rel (!%p22_p10) target bundleno = 9 (0x9), region = 126 }
0x11d9   : > { %s3749_s22 = smov %s3742_s23 }
0x11da   : > { %s3750_s23 = smov %s3743_s17 }
0x11de   :  { %2325 = vsyncpa [#allocation4], 1 }
0x11df   :  { %2327 = vsyncpa [#allocation4 + $0x1], 1 }

</bundles_post_ra>
